<compile_context>
chip_gen: v7x
topology: tpu7x:2x2x1
jax: 0.10.0
libtpu: 0.0.40
codegen_flags: <defaults>
</compile_context>

<pallas_src>
import functools
import math

import jax
import jax.numpy as jnp
import numpy as np
from jax.experimental import pallas as pl
from jax.experimental.pallas import tpu as pltpu

# -------------------- model hyper-parameters (module defaults) ---------------
INPUT_SIZE = 16
FEATURE_DIM = 32
NUM_LAYERS = 6
NUM_HEADS = 4
HEAD_DIM = FEATURE_DIM // NUM_HEADS
DIM_FF = 64
LN_EPS = 1e-5

# small example shapes
N = 2   # batch
L = 8   # sequence length

_NEG_INF = -1e9


def _layer_norm_rows(x, g, b):
    mu = jnp.mean(x, axis=-1, keepdims=True)
    var = jnp.mean((x - mu) ** 2, axis=-1, keepdims=True)
    return (x - mu) * jax.lax.rsqrt(var + LN_EPS) * g + b


# ============================ fused Pallas kernel =============================
# One grid step == one encoder layer.  The activation is carried in the
# resident output block (constant out index_map across the "arbitrary" layer
# axis); per-layer weights are DMA'd per step and pipelined by BlockSpec.
def _encoder_layer_kernel(bias_ref, x_ref, w_in_ref, b_in_ref,
                          wqkv_ref, wo_ref, w1_ref, w2_ref, vec_ref, o_ref):
    D = FEATURE_DIM
    FF = DIM_FF
    hd = HEAD_DIM
    li = pl.program_id(0)

    # ---- feature projection + ReLU (first grid step only) -------------------
    @pl.when(li == 0)
    def _():
        proj = jnp.dot(x_ref[...], w_in_ref[...],
                       preferred_element_type=jnp.float32)
        o_ref[...] = jnp.maximum(proj + b_in_ref[...], 0.0)

    x = o_ref[...]                        # activation carried across layers

    wqkv = wqkv_ref[0]                    # (D, 3D)  (Q columns pre-scaled)
    wo = wo_ref[0]                        # (D, D)
    w1 = w1_ref[0]                        # (D, FF)
    w2 = w2_ref[0]                        # (FF, D)
    vec = vec_ref[0]                      # (8, 3D) packed bias / LN slab
    bqkv = vec[0:1, :]
    bo = vec[1:2, :D]
    b1 = vec[2:3, :FF]
    b2 = vec[3:4, :D]
    ln1g, ln1b = vec[4:5, :D], vec[5:6, :D]
    ln2g, ln2b = vec[6:7, :D], vec[7:8, :D]

    attn_bias = bias_ref[...]             # (R, R) block-diagonal mask (trace-time const)

    # ---- multi-head self-attention -------------------------------------------
    qkv = jnp.dot(x, wqkv, preferred_element_type=jnp.float32) + bqkv
    q = qkv[:, :D]
    k = qkv[:, D:2 * D]
    v = qkv[:, 2 * D:]

    attn = jnp.zeros_like(x)
    for h in range(NUM_HEADS):            # static unroll: 4 heads
        sl = slice(h * hd, (h + 1) * hd)
        # q_h @ k_h^T without an explicit transpose (contract last dims);
        # 1/sqrt(hd) is already folded into the Q weights.
        s = jax.lax.dot_general(q[:, sl], k[:, sl],
                                (((1,), (1,)), ((), ())),
                                preferred_element_type=jnp.float32)
        s = s + attn_bias
        s = s - jnp.max(s, axis=-1, keepdims=True)
        p = jnp.exp(s)
        p = p / jnp.sum(p, axis=-1, keepdims=True)      # exact normalization
        oh = jnp.dot(p, v[:, sl], preferred_element_type=jnp.float32)
        # Fold output projection per head (== concat(heads) @ Wo):
        # avoids the lane-axis concatenate entirely.
        attn = attn + jnp.dot(oh, wo[sl, :], preferred_element_type=jnp.float32)
    attn = attn + bo

    # ---- residual + LayerNorm1 (norm_first=False -> post-norm) ---------------
    y = _layer_norm_rows(x + attn, ln1g, ln1b)

    # ---- feed-forward (ReLU, PyTorch default) --------------------------------
    h1 = jnp.maximum(jnp.dot(y, w1, preferred_element_type=jnp.float32) + b1, 0.0)
    h2 = jnp.dot(h1, w2, preferred_element_type=jnp.float32) + b2

    # ---- residual + LayerNorm2 ------------------------------------------------
    o_ref[...] = _layer_norm_rows(y + h2, ln2g, ln2b)


def _cost_estimate(r):
    D, FF, H, hd = FEATURE_DIM, DIM_FF, NUM_HEADS, HEAD_DIM
    per_layer = (2 * r * D * 3 * D
                 + H * (2 * r * r * hd + 2 * r * r * hd + 2 * r * hd * D)
                 + 2 * r * D * FF + 2 * r * FF * D)
    flops = 2 * r * INPUT_SIZE * D + NUM_LAYERS * per_layer
    transcendentals = NUM_LAYERS * (H * r * r + 2 * r)
    bytes_accessed = 4 * (r * INPUT_SIZE + INPUT_SIZE * D + D + r * r + r * D
                          + NUM_LAYERS * (D * 3 * D + D * D + 2 * D * FF + 8 * 3 * D))
    return pl.CostEstimate(flops=flops, transcendentals=transcendentals,
                           bytes_accessed=bytes_accessed)


# ============================ pallas_call wrapper =============================
@jax.jit
def transformer_encoder_forward(x, params):
    n, l, din = x.shape
    r = n * l
    D, FF, W3 = FEATURE_DIM, DIM_FF, 3 * FEATURE_DIM

    # Block-diagonal attention bias (each length-l sequence attends only to
    # itself although all n*l rows are processed as one block).  n, l are
    # Python ints at trace time -> build once with numpy, pass as a tiny
    # resident input instead of computing iota/int-div/select in-kernel.
    seq_id = np.arange(r) // l
    attn_bias = jnp.asarray(
        np.where(seq_id[:, None] == seq_id[None, :], 0.0, _NEG_INF).astype(np.float32))

    grid_spec = pltpu.PrefetchScalarGridSpec(
        num_scalar_prefetch=0,
        grid=(NUM_LAYERS,),
        in_specs=[
            pl.BlockSpec((r, r), lambda li: (0, 0)),             # attn bias (resident)
            pl.BlockSpec((r, din), lambda li: (0, 0)),           # input rows (resident)
            pl.BlockSpec((din, D), lambda li: (0, 0)),           # w_in
            pl.BlockSpec((1, D), lambda li: (0, 0)),             # b_in
            pl.BlockSpec((1, D, W3), lambda li: (li, 0, 0)),     # wqkv  (per layer)
            pl.BlockSpec((1, D, D), lambda li: (li, 0, 0)),      # wo
            pl.BlockSpec((1, D, FF), lambda li: (li, 0, 0)),     # w1
            pl.BlockSpec((1, FF, D), lambda li: (li, 0, 0)),     # w2
            pl.BlockSpec((1, 8, W3), lambda li: (li, 0, 0)),     # bias/LN slab
        ],
        out_specs=pl.BlockSpec((r, D), lambda li: (0, 0)),       # resident accumulator
    )

    out = pl.pallas_call(
        _encoder_layer_kernel,
        grid_spec=grid_spec,
        out_shape=jax.ShapeDtypeStruct((r, FEATURE_DIM), jnp.float32),
        compiler_params=pltpu.CompilerParams(
            dimension_semantics=("arbitrary",),      # layer axis carries the activation
            vmem_limit_bytes=32 * 1024 * 1024),
        cost_estimate=_cost_estimate(r),
    )(attn_bias, x.reshape(r, din), params["w_in"], params["b_in"],
      params["wqkv"], params["wo"], params["w1"], params["w2"], params["vec"])

    # self.activation is None by default -> identity
    return out.reshape(n, l, FEATURE_DIM)


# ============================ parameter init =================================
def init_params(key):
    D, FF, W3 = FEATURE_DIM, DIM_FF, 3 * FEATURE_DIM
    scale = 1.0 / math.sqrt(HEAD_DIM)

    def linear(k, fan_in, fan_out):
        bound = 1.0 / math.sqrt(fan_in)
        kw, kb = jax.random.split(k)
        w = jax.random.uniform(kw, (fan_in, fan_out), jnp.float32, -bound, bound)
        b = jax.random.uniform(kb, (fan_out,), jnp.float32, -bound, bound)
        return w, b

    def pad_row(v):
        return jnp.pad(v, (0, W3 - v.shape[0]))

    keys = jax.random.split(key, 1 + NUM_LAYERS)
    w_in, b_in = linear(keys[0], INPUT_SIZE, D)

    wqkv_l, wo_l, w1_l, w2_l, vec_l = [], [], [], [], []
    for li in range(NUM_LAYERS):
        k1, k2, k3, k4 = jax.random.split(keys[1 + li], 4)
        wqkv, bqkv = linear(k1, D, W3)
        wo, bo = linear(k2, D, D)
        w1, b1 = linear(k3, D, FF)
        w2, b2 = linear(k4, FF, D)
        # Fold the 1/sqrt(head_dim) attention scale into the Q projection
        # (columns [0:D] of wqkv / bqkv) -- mathematically identical to the
        # usual scaled dot-product attention, saves a VPU multiply per head.
        wqkv = wqkv.at[:, :D].multiply(scale)
        bqkv = bqkv.at[:D].multiply(scale)
        # packed per-layer vector slab: rows = [bqkv, bo, b1, b2, ln1g, ln1b, ln2g, ln2b]
        vec = jnp.stack([pad_row(bqkv), pad_row(bo), pad_row(b1), pad_row(b2),
                         pad_row(jnp.ones(D, jnp.float32)),
                         pad_row(jnp.zeros(D, jnp.float32)),
                         pad_row(jnp.ones(D, jnp.float32)),
                         pad_row(jnp.zeros(D, jnp.float32))], axis=0)
        wqkv_l.append(wqkv); wo_l.append(wo)
        w1_l.append(w1); w2_l.append(w2); vec_l.append(vec)

    return dict(
        w_in=w_in, b_in=b_in.reshape(1, D),
        wqkv=jnp.stack(wqkv_l), wo=jnp.stack(wo_l),
        w1=jnp.stack(w1_l), w2=jnp.stack(w2_l), vec=jnp.stack(vec_l),
    )


# ============================ pure-JAX reference =============================
def ref_forward(x, params):
    D, FF, hd = FEATURE_DIM, DIM_FF, HEAD_DIM
    n, l, _ = x.shape
    x = jax.nn.relu(x @ params["w_in"] + params["b_in"])
    for li in range(NUM_LAYERS):
        wqkv, wo = params["wqkv"][li], params["wo"][li]
        w1, w2 = params["w1"][li], params["w2"][li]
        vec = params["vec"][li]
        bqkv, bo, b1, b2 = vec[0], vec[1, :D], vec[2, :FF], vec[3, :D]
        ln1g, ln1b, ln2g, ln2b = vec[4, :D], vec[5, :D], vec[6, :D], vec[7, :D]

        qkv = x @ wqkv + bqkv
        q, k, v = qkv[..., :D], qkv[..., D:2 * D], qkv[..., 2 * D:]
        split = lambda t: t.reshape(n, l, NUM_HEADS, hd).transpose(0, 2, 1, 3)
        qh, kh, vh = split(q), split(k), split(v)
        # NOTE: 1/sqrt(hd) is folded into wqkv/bqkv at init time (see init_params).
        s = jnp.einsum("nhqd,nhkd->nhqk", qh, kh)
        a = jax.nn.softmax(s, axis=-1)
        o = jnp.einsum("nhqk,nhkd->nhqd", a, vh).transpose(0, 2, 1, 3).reshape(n, l, D)
        o = o @ wo + bo

        y = _layer_norm_rows(x + o, ln1g, ln1b)
        f = jax.nn.relu(y @ w1 + b1) @ w2 + b2
        x = _layer_norm_rows(y + f, ln2g, ln2b)
    return x


# ================================ main =======================================
if __name__ == "__main__":
    key = jax.random.PRNGKey(0)
    kx, kp = jax.random.split(key)
    x = jax.random.normal(kx, (N, L, INPUT_SIZE), jnp.float32)
    params = init_params(kp)

    out = jax.block_until_ready(transformer_encoder_forward(x, params))
    assert out.shape == (N, L, FEATURE_DIM)

    ref = jax.block_until_ready(ref_forward(x, params))
    # exact softmax normalization now; tolerance only covers MXU default-precision
    # accumulation-order differences between the kernel and the XLA reference.
    np.testing.assert_allclose(np.asarray(out), np.asarray(ref),
                               rtol=2e-3, atol=2e-3)

    print("KERNEL_OK")
</pallas_src>

<mosaic_0001>
module attributes {stable_mosaic.version = 11 : i64} {
  func.func @_encoder_layer_kernel(%arg0: i32, %arg1: memref<16x16xf32, #tpu.memory_space<vmem>>, %arg2: memref<16x16xf32, #tpu.memory_space<vmem>>, %arg3: memref<16x32xf32, #tpu.memory_space<vmem>>, %arg4: memref<1x32xf32, #tpu.memory_space<vmem>>, %arg5: memref<1x32x96xf32, #tpu.memory_space<vmem>>, %arg6: memref<1x32x32xf32, #tpu.memory_space<vmem>>, %arg7: memref<1x32x64xf32, #tpu.memory_space<vmem>>, %arg8: memref<1x64x32xf32, #tpu.memory_space<vmem>>, %arg9: memref<1x8x96xf32, #tpu.memory_space<vmem>>, %arg10: memref<16x32xf32, #tpu.memory_space<vmem>>) attributes {dimension_semantics = [#tpu.dimension_semantics<arbitrary>], iteration_bounds = array<i64: 6>, scalar_prefetch = 0 : i64, scratch_operands = 0 : i64, tpu.core_type = #tpu.core_type<tc>, window_params = [{pipeline_mode = #tpu.pipeline_mode<synchronous>, transform_indices = @transform_0, window_bounds = array<i64: 16, 16>}, {pipeline_mode = #tpu.pipeline_mode<synchronous>, transform_indices = @transform_1, window_bounds = array<i64: 16, 16>}, {pipeline_mode = #tpu.pipeline_mode<synchronous>, transform_indices = @transform_2, window_bounds = array<i64: 16, 32>}, {pipeline_mode = #tpu.pipeline_mode<synchronous>, transform_indices = @transform_3, window_bounds = array<i64: 1, 32>}, {transform_indices = @transform_4, window_bounds = array<i64: 1, 32, 96>}, {transform_indices = @transform_5, window_bounds = array<i64: 1, 32, 32>}, {transform_indices = @transform_6, window_bounds = array<i64: 1, 32, 64>}, {transform_indices = @transform_7, window_bounds = array<i64: 1, 64, 32>}, {transform_indices = @transform_8, window_bounds = array<i64: 1, 8, 96>}, {pipeline_mode = #tpu.pipeline_mode<synchronous>, transform_indices = @transform_9, window_bounds = array<i64: 16, 32>}]} {
    %c0_i32 = arith.constant 0 : i32
    %0 = arith.cmpi eq, %arg0, %c0_i32 : i32
    %1 = arith.extui %0 : i1 to i32
    %c0_i32_0 = arith.constant 0 : i32
    %2 = arith.cmpi ne, %1, %c0_i32_0 : i32
    scf.if %2 {
      %c0_55 = arith.constant 0 : index
      %c0_56 = arith.constant 0 : index
      %159 = vector.load %arg2[%c0_55, %c0_56] : memref<16x16xf32, #tpu.memory_space<vmem>>, vector<16x16xf32>
      %c0_57 = arith.constant 0 : index
      %c0_58 = arith.constant 0 : index
      %160 = vector.load %arg3[%c0_57, %c0_58] : memref<16x32xf32, #tpu.memory_space<vmem>>, vector<16x32xf32>
      %cst_59 = arith.constant dense<0.000000e+00> : vector<16x32xf32>
      %161 = tpu.matmul %159, %160, %cst_59 {dimension_numbers = #tpu.dot_dimension_numbers<[1], [0], [0], [1], [0, 0, 1, 1], [], []>} : vector<16x16xf32>, vector<16x32xf32>, vector<16x32xf32> -> vector<16x32xf32>
      %c0_60 = arith.constant 0 : index
      %c0_61 = arith.constant 0 : index
      %162 = vector.load %arg4[%c0_60, %c0_61] : memref<1x32xf32, #tpu.memory_space<vmem>>, vector<1x32xf32>
      %163 = vector.broadcast %162 : vector<1x32xf32> to vector<16x32xf32>
      %164 = arith.addf %161, %163 : vector<16x32xf32>
      %cst_62 = arith.constant 0.000000e+00 : f32
      %165 = vector.broadcast %cst_62 : f32 to vector<16x32xf32>
      %166 = arith.maximumf %164, %165 : vector<16x32xf32>
      %c0_63 = arith.constant 0 : index
      %c0_64 = arith.constant 0 : index
      %167 = vector.load %arg10[%c0_63, %c0_64] : memref<16x32xf32, #tpu.memory_space<vmem>>, vector<16x32xf32>
      tpu.vector_store %arg10[%c0_63, %c0_64], %166 {strides = array<i32>} : memref<16x32xf32, #tpu.memory_space<vmem>>, vector<16x32xf32>,
    } else {
    }
    %c0 = arith.constant 0 : index
    %c0_1 = arith.constant 0 : index
    %3 = vector.load %arg10[%c0, %c0_1] : memref<16x32xf32, #tpu.memory_space<vmem>>, vector<16x32xf32>
    %c0_2 = arith.constant 0 : index
    %c0_3 = arith.constant 0 : index
    %c0_4 = arith.constant 0 : index
    %4 = vector.load %arg5[%c0_2, %c0_3, %c0_4] : memref<1x32x96xf32, #tpu.memory_space<vmem>>, vector<1x32x96xf32>
    %5 = vector.shape_cast %4 : vector<1x32x96xf32> to vector<32x96xf32>
    %c0_5 = arith.constant 0 : index
    %c0_6 = arith.constant 0 : index
    %c0_7 = arith.constant 0 : index
    %6 = vector.load %arg6[%c0_5, %c0_6, %c0_7] : memref<1x32x32xf32, #tpu.memory_space<vmem>>, vector<1x32x32xf32>
    %7 = vector.shape_cast %6 : vector<1x32x32xf32> to vector<32x32xf32>
    %c0_8 = arith.constant 0 : index
    %c0_9 = arith.constant 0 : index
    %c0_10 = arith.constant 0 : index
    %8 = vector.load %arg7[%c0_8, %c0_9, %c0_10] : memref<1x32x64xf32, #tpu.memory_space<vmem>>, vector<1x32x64xf32>
    %9 = vector.shape_cast %8 : vector<1x32x64xf32> to vector<32x64xf32>
    %c0_11 = arith.constant 0 : index
    %c0_12 = arith.constant 0 : index
    %c0_13 = arith.constant 0 : index
    %10 = vector.load %arg8[%c0_11, %c0_12, %c0_13] : memref<1x64x32xf32, #tpu.memory_space<vmem>>, vector<1x64x32xf32>
    %11 = vector.shape_cast %10 : vector<1x64x32xf32> to vector<64x32xf32>
    %c0_14 = arith.constant 0 : index
    %c0_15 = arith.constant 0 : index
    %c0_16 = arith.constant 0 : index
    %12 = vector.load %arg9[%c0_14, %c0_15, %c0_16] : memref<1x8x96xf32, #tpu.memory_space<vmem>>, vector<1x8x96xf32>
    %13 = vector.shape_cast %12 : vector<1x8x96xf32> to vector<8x96xf32>
    %14 = vector.extract_strided_slice %13 {offsets = [0, 0], sizes = [1, 96], strides = [1, 1]} : vector<8x96xf32> to vector<1x96xf32>
    %15 = vector.extract_strided_slice %13 {offsets = [1, 0], sizes = [1, 32], strides = [1, 1]} : vector<8x96xf32> to vector<1x32xf32>
    %16 = vector.extract_strided_slice %13 {offsets = [2, 0], sizes = [1, 64], strides = [1, 1]} : vector<8x96xf32> to vector<1x64xf32>
    %17 = vector.extract_strided_slice %13 {offsets = [3, 0], sizes = [1, 32], strides = [1, 1]} : vector<8x96xf32> to vector<1x32xf32>
    %18 = vector.extract_strided_slice %13 {offsets = [4, 0], sizes = [1, 32], strides = [1, 1]} : vector<8x96xf32> to vector<1x32xf32>
    %19 = vector.extract_strided_slice %13 {offsets = [5, 0], sizes = [1, 32], strides = [1, 1]} : vector<8x96xf32> to vector<1x32xf32>
    %20 = vector.extract_strided_slice %13 {offsets = [6, 0], sizes = [1, 32], strides = [1, 1]} : vector<8x96xf32> to vector<1x32xf32>
    %21 = vector.extract_strided_slice %13 {offsets = [7, 0], sizes = [1, 32], strides = [1, 1]} : vector<8x96xf32> to vector<1x32xf32>
    %c0_17 = arith.constant 0 : index
    %c0_18 = arith.constant 0 : index
    %22 = vector.load %arg1[%c0_17, %c0_18] : memref<16x16xf32, #tpu.memory_space<vmem>>, vector<16x16xf32>
    %cst = arith.constant dense<0.000000e+00> : vector<16x96xf32>
    %23 = tpu.matmul %3, %5, %cst {dimension_numbers = #tpu.dot_dimension_numbers<[1], [0], [0], [1], [0, 0, 1, 1], [], []>} : vector<16x32xf32>, vector<32x96xf32>, vector<16x96xf32> -> vector<16x96xf32>
    %24 = vector.broadcast %14 : vector<1x96xf32> to vector<16x96xf32>
    %25 = arith.addf %23, %24 : vector<16x96xf32>
    %26 = vector.extract_strided_slice %25 {offsets = [0, 0], sizes = [16, 32], strides = [1, 1]} : vector<16x96xf32> to vector<16x32xf32>
    %27 = vector.extract_strided_slice %25 {offsets = [0, 32], sizes = [16, 32], strides = [1, 1]} : vector<16x96xf32> to vector<16x32xf32>
    %28 = vector.extract_strided_slice %25 {offsets = [0, 64], sizes = [16, 32], strides = [1, 1]} : vector<16x96xf32> to vector<16x32xf32>
    %cst_19 = arith.constant 0.000000e+00 : f32
    %29 = vector.broadcast %cst_19 : f32 to vector<16x32xf32>
    %30 = vector.extract_strided_slice %26 {offsets = [0, 0], sizes = [16, 8], strides = [1, 1]} : vector<16x32xf32> to vector<16x8xf32>
    %31 = vector.extract_strided_slice %27 {offsets = [0, 0], sizes = [16, 8], strides = [1, 1]} : vector<16x32xf32> to vector<16x8xf32>
    %cst_20 = arith.constant dense<0.000000e+00> : vector<16x16xf32>
    %32 = tpu.matmul %30, %31, %cst_20 {dimension_numbers = #tpu.dot_dimension_numbers<[1], [1], [0], [0], [0, 0, 1, 0], [], []>} : vector<16x8xf32>, vector<16x8xf32>, vector<16x16xf32> -> vector<16x16xf32>
    %33 = arith.addf %32, %22 : vector<16x16xf32>
    %cst_21 = arith.constant dense<0xFF800000> : vector<16xf32>
    %34 = vector.multi_reduction <maximumf>, %33, %cst_21 [1] : vector<16x16xf32> to vector<16xf32>
    %35 = vector.shape_cast %34 : vector<16xf32> to vector<16x1xf32>
    %36 = vector.broadcast %35 : vector<16x1xf32> to vector<16x16xf32>
    %37 = arith.subf %33, %36 : vector<16x16xf32>
    %38 = math.exp %37 : vector<16x16xf32>
    %cst_22 = arith.constant dense<0.000000e+00> : vector<16xf32>
    %39 = vector.multi_reduction <add>, %38, %cst_22 [1] : vector<16x16xf32> to vector<16xf32>
    %40 = vector.shape_cast %39 : vector<16xf32> to vector<16x1xf32>
    %41 = vector.broadcast %40 : vector<16x1xf32> to vector<16x16xf32>
    %42 = arith.divf %38, %41 : vector<16x16xf32>
    %43 = vector.extract_strided_slice %28 {offsets = [0, 0], sizes = [16, 8], strides = [1, 1]} : vector<16x32xf32> to vector<16x8xf32>
    %cst_23 = arith.constant dense<0.000000e+00> : vector<16x8xf32>
    %44 = tpu.matmul %42, %43, %cst_23 {dimension_numbers = #tpu.dot_dimension_numbers<[1], [0], [0], [1], [0, 0, 1, 1], [], []>} : vector<16x16xf32>, vector<16x8xf32>, vector<16x8xf32> -> vector<16x8xf32>
    %45 = vector.extract_strided_slice %7 {offsets = [0, 0], sizes = [8, 32], strides = [1, 1]} : vector<32x32xf32> to vector<8x32xf32>
    %cst_24 = arith.constant dense<0.000000e+00> : vector<16x32xf32>
    %46 = tpu.matmul %44, %45, %cst_24 {dimension_numbers = #tpu.dot_dimension_numbers<[1], [0], [0], [1], [0, 0, 1, 1], [], []>} : vector<16x8xf32>, vector<8x32xf32>, vector<16x32xf32> -> vector<16x32xf32>
    %47 = arith.addf %29, %46 : vector<16x32xf32>
    %48 = vector.extract_strided_slice %26 {offsets = [0, 8], sizes = [16, 8], strides = [1, 1]} : vector<16x32xf32> to vector<16x8xf32>
    %49 = vector.extract_strided_slice %27 {offsets = [0, 8], sizes = [16, 8], strides = [1, 1]} : vector<16x32xf32> to vector<16x8xf32>
    %cst_25 = arith.constant dense<0.000000e+00> : vector<16x16xf32>
    %50 = tpu.matmul %48, %49, %cst_25 {dimension_numbers = #tpu.dot_dimension_numbers<[1], [1], [0], [0], [0, 0, 1, 0], [], []>} : vector<16x8xf32>, vector<16x8xf32>, vector<16x16xf32> -> vector<16x16xf32>
    %51 = arith.addf %50, %22 : vector<16x16xf32>
    %cst_26 = arith.constant dense<0xFF800000> : vector<16xf32>
    %52 = vector.multi_reduction <maximumf>, %51, %cst_26 [1] : vector<16x16xf32> to vector<16xf32>
    %53 = vector.shape_cast %52 : vector<16xf32> to vector<16x1xf32>
    %54 = vector.broadcast %53 : vector<16x1xf32> to vector<16x16xf32>
    %55 = arith.subf %51, %54 : vector<16x16xf32>
    %56 = math.exp %55 : vector<16x16xf32>
    %cst_27 = arith.constant dense<0.000000e+00> : vector<16xf32>
    %57 = vector.multi_reduction <add>, %56, %cst_27 [1] : vector<16x16xf32> to vector<16xf32>
    %58 = vector.shape_cast %57 : vector<16xf32> to vector<16x1xf32>
    %59 = vector.broadcast %58 : vector<16x1xf32> to vector<16x16xf32>
    %60 = arith.divf %56, %59 : vector<16x16xf32>
    %61 = vector.extract_strided_slice %28 {offsets = [0, 8], sizes = [16, 8], strides = [1, 1]} : vector<16x32xf32> to vector<16x8xf32>
    %cst_28 = arith.constant dense<0.000000e+00> : vector<16x8xf32>
    %62 = tpu.matmul %60, %61, %cst_28 {dimension_numbers = #tpu.dot_dimension_numbers<[1], [0], [0], [1], [0, 0, 1, 1], [], []>} : vector<16x16xf32>, vector<16x8xf32>, vector<16x8xf32> -> vector<16x8xf32>
    %63 = vector.extract_strided_slice %7 {offsets = [8, 0], sizes = [8, 32], strides = [1, 1]} : vector<32x32xf32> to vector<8x32xf32>
    %cst_29 = arith.constant dense<0.000000e+00> : vector<16x32xf32>
    %64 = tpu.matmul %62, %63, %cst_29 {dimension_numbers = #tpu.dot_dimension_numbers<[1], [0], [0], [1], [0, 0, 1, 1], [], []>} : vector<16x8xf32>, vector<8x32xf32>, vector<16x32xf32> -> vector<16x32xf32>
    %65 = arith.addf %47, %64 : vector<16x32xf32>
    %66 = vector.extract_strided_slice %26 {offsets = [0, 16], sizes = [16, 8], strides = [1, 1]} : vector<16x32xf32> to vector<16x8xf32>
    %67 = vector.extract_strided_slice %27 {offsets = [0, 16], sizes = [16, 8], strides = [1, 1]} : vector<16x32xf32> to vector<16x8xf32>
    %cst_30 = arith.constant dense<0.000000e+00> : vector<16x16xf32>
    %68 = tpu.matmul %66, %67, %cst_30 {dimension_numbers = #tpu.dot_dimension_numbers<[1], [1], [0], [0], [0, 0, 1, 0], [], []>} : vector<16x8xf32>, vector<16x8xf32>, vector<16x16xf32> -> vector<16x16xf32>
    %69 = arith.addf %68, %22 : vector<16x16xf32>
    %cst_31 = arith.constant dense<0xFF800000> : vector<16xf32>
    %70 = vector.multi_reduction <maximumf>, %69, %cst_31 [1] : vector<16x16xf32> to vector<16xf32>
    %71 = vector.shape_cast %70 : vector<16xf32> to vector<16x1xf32>
    %72 = vector.broadcast %71 : vector<16x1xf32> to vector<16x16xf32>
    %73 = arith.subf %69, %72 : vector<16x16xf32>
    %74 = math.exp %73 : vector<16x16xf32>
    %cst_32 = arith.constant dense<0.000000e+00> : vector<16xf32>
    %75 = vector.multi_reduction <add>, %74, %cst_32 [1] : vector<16x16xf32> to vector<16xf32>
    %76 = vector.shape_cast %75 : vector<16xf32> to vector<16x1xf32>
    %77 = vector.broadcast %76 : vector<16x1xf32> to vector<16x16xf32>
    %78 = arith.divf %74, %77 : vector<16x16xf32>
    %79 = vector.extract_strided_slice %28 {offsets = [0, 16], sizes = [16, 8], strides = [1, 1]} : vector<16x32xf32> to vector<16x8xf32>
    %cst_33 = arith.constant dense<0.000000e+00> : vector<16x8xf32>
    %80 = tpu.matmul %78, %79, %cst_33 {dimension_numbers = #tpu.dot_dimension_numbers<[1], [0], [0], [1], [0, 0, 1, 1], [], []>} : vector<16x16xf32>, vector<16x8xf32>, vector<16x8xf32> -> vector<16x8xf32>
    %81 = vector.extract_strided_slice %7 {offsets = [16, 0], sizes = [8, 32], strides = [1, 1]} : vector<32x32xf32> to vector<8x32xf32>
    %cst_34 = arith.constant dense<0.000000e+00> : vector<16x32xf32>
    %82 = tpu.matmul %80, %81, %cst_34 {dimension_numbers = #tpu.dot_dimension_numbers<[1], [0], [0], [1], [0, 0, 1, 1], [], []>} : vector<16x8xf32>, vector<8x32xf32>, vector<16x32xf32> -> vector<16x32xf32>
    %83 = arith.addf %65, %82 : vector<16x32xf32>
    %84 = vector.extract_strided_slice %26 {offsets = [0, 24], sizes = [16, 8], strides = [1, 1]} : vector<16x32xf32> to vector<16x8xf32>
    %85 = vector.extract_strided_slice %27 {offsets = [0, 24], sizes = [16, 8], strides = [1, 1]} : vector<16x32xf32> to vector<16x8xf32>
    %cst_35 = arith.constant dense<0.000000e+00> : vector<16x16xf32>
    %86 = tpu.matmul %84, %85, %cst_35 {dimension_numbers = #tpu.dot_dimension_numbers<[1], [1], [0], [0], [0, 0, 1, 0], [], []>} : vector<16x8xf32>, vector<16x8xf32>, vector<16x16xf32> -> vector<16x16xf32>
    %87 = arith.addf %86, %22 : vector<16x16xf32>
    %cst_36 = arith.constant dense<0xFF800000> : vector<16xf32>
    %88 = vector.multi_reduction <maximumf>, %87, %cst_36 [1] : vector<16x16xf32> to vector<16xf32>
    %89 = vector.shape_cast %88 : vector<16xf32> to vector<16x1xf32>
    %90 = vector.broadcast %89 : vector<16x1xf32> to vector<16x16xf32>
    %91 = arith.subf %87, %90 : vector<16x16xf32>
    %92 = math.exp %91 : vector<16x16xf32>
    %cst_37 = arith.constant dense<0.000000e+00> : vector<16xf32>
    %93 = vector.multi_reduction <add>, %92, %cst_37 [1] : vector<16x16xf32> to vector<16xf32>
    %94 = vector.shape_cast %93 : vector<16xf32> to vector<16x1xf32>
    %95 = vector.broadcast %94 : vector<16x1xf32> to vector<16x16xf32>
    %96 = arith.divf %92, %95 : vector<16x16xf32>
    %97 = vector.extract_strided_slice %28 {offsets = [0, 24], sizes = [16, 8], strides = [1, 1]} : vector<16x32xf32> to vector<16x8xf32>
    %cst_38 = arith.constant dense<0.000000e+00> : vector<16x8xf32>
    %98 = tpu.matmul %96, %97, %cst_38 {dimension_numbers = #tpu.dot_dimension_numbers<[1], [0], [0], [1], [0, 0, 1, 1], [], []>} : vector<16x16xf32>, vector<16x8xf32>, vector<16x8xf32> -> vector<16x8xf32>
    %99 = vector.extract_strided_slice %7 {offsets = [24, 0], sizes = [8, 32], strides = [1, 1]} : vector<32x32xf32> to vector<8x32xf32>
    %cst_39 = arith.constant dense<0.000000e+00> : vector<16x32xf32>
    %100 = tpu.matmul %98, %99, %cst_39 {dimension_numbers = #tpu.dot_dimension_numbers<[1], [0], [0], [1], [0, 0, 1, 1], [], []>} : vector<16x8xf32>, vector<8x32xf32>, vector<16x32xf32> -> vector<16x32xf32>
    %101 = arith.addf %83, %100 : vector<16x32xf32>
    %102 = vector.broadcast %15 : vector<1x32xf32> to vector<16x32xf32>
    %103 = arith.addf %101, %102 : vector<16x32xf32>
    %104 = arith.addf %3, %103 : vector<16x32xf32>
    %cst_40 = arith.constant dense<0.000000e+00> : vector<16xf32>
    %105 = vector.multi_reduction <add>, %104, %cst_40 [1] : vector<16x32xf32> to vector<16xf32>
    %106 = vector.shape_cast %105 : vector<16xf32> to vector<16x1xf32>
    %cst_41 = arith.constant 3.200000e+01 : f32
    %107 = vector.broadcast %cst_41 : f32 to vector<16x1xf32>
    %108 = arith.divf %106, %107 : vector<16x1xf32>
    %109 = vector.broadcast %108 : vector<16x1xf32> to vector<16x32xf32>
    %110 = arith.subf %104, %109 : vector<16x32xf32>
    %111 = arith.mulf %110, %110 : vector<16x32xf32>
    %cst_42 = arith.constant dense<0.000000e+00> : vector<16xf32>
    %112 = vector.multi_reduction <add>, %111, %cst_42 [1] : vector<16x32xf32> to vector<16xf32>
    %113 = vector.shape_cast %112 : vector<16xf32> to vector<16x1xf32>
    %cst_43 = arith.constant 3.200000e+01 : f32
    %114 = vector.broadcast %cst_43 : f32 to vector<16x1xf32>
    %115 = arith.divf %113, %114 : vector<16x1xf32>
    %116 = vector.broadcast %108 : vector<16x1xf32> to vector<16x32xf32>
    %117 = arith.subf %104, %116 : vector<16x32xf32>
    %cst_44 = arith.constant 9.99999974E-6 : f32
    %118 = vector.broadcast %cst_44 : f32 to vector<16x1xf32>
    %119 = arith.addf %115, %118 : vector<16x1xf32>
    %120 = math.rsqrt %119 : vector<16x1xf32>
    %121 = vector.broadcast %120 : vector<16x1xf32> to vector<16x32xf32>
    %122 = arith.mulf %117, %121 : vector<16x32xf32>
    %123 = vector.broadcast %18 : vector<1x32xf32> to vector<16x32xf32>
    %124 = arith.mulf %122, %123 : vector<16x32xf32>
    %125 = vector.broadcast %19 : vector<1x32xf32> to vector<16x32xf32>
    %126 = arith.addf %124, %125 : vector<16x32xf32>
    %cst_45 = arith.constant dense<0.000000e+00> : vector<16x64xf32>
    %127 = tpu.matmul %126, %9, %cst_45 {dimension_numbers = #tpu.dot_dimension_numbers<[1], [0], [0], [1], [0, 0, 1, 1], [], []>} : vector<16x32xf32>, vector<32x64xf32>, vector<16x64xf32> -> vector<16x64xf32>
    %128 = vector.broadcast %16 : vector<1x64xf32> to vector<16x64xf32>
    %129 = arith.addf %127, %128 : vector<16x64xf32>
    %cst_46 = arith.constant 0.000000e+00 : f32
    %130 = vector.broadcast %cst_46 : f32 to vector<16x64xf32>
    %131 = arith.maximumf %129, %130 : vector<16x64xf32>
    %cst_47 = arith.constant dense<0.000000e+00> : vector<16x32xf32>
    %132 = tpu.matmul %131, %11, %cst_47 {dimension_numbers = #tpu.dot_dimension_numbers<[1], [0], [0], [1], [0, 0, 1, 1], [], []>} : vector<16x64xf32>, vector<64x32xf32>, vector<16x32xf32> -> vector<16x32xf32>
    %133 = vector.broadcast %17 : vector<1x32xf32> to vector<16x32xf32>
    %134 = arith.addf %132, %133 : vector<16x32xf32>
    %135 = arith.addf %126, %134 : vector<16x32xf32>
    %cst_48 = arith.constant dense<0.000000e+00> : vector<16xf32>
    %136 = vector.multi_reduction <add>, %135, %cst_48 [1] : vector<16x32xf32> to vector<16xf32>
    %137 = vector.shape_cast %136 : vector<16xf32> to vector<16x1xf32>
    %cst_49 = arith.constant 3.200000e+01 : f32
    %138 = vector.broadcast %cst_49 : f32 to vector<16x1xf32>
    %139 = arith.divf %137, %138 : vector<16x1xf32>
    %140 = vector.broadcast %139 : vector<16x1xf32> to vector<16x32xf32>
    %141 = arith.subf %135, %140 : vector<16x32xf32>
    %142 = arith.mulf %141, %141 : vector<16x32xf32>
    %cst_50 = arith.constant dense<0.000000e+00> : vector<16xf32>
    %143 = vector.multi_reduction <add>, %142, %cst_50 [1] : vector<16x32xf32> to vector<16xf32>
    %144 = vector.shape_cast %143 : vector<16xf32> to vector<16x1xf32>
    %cst_51 = arith.constant 3.200000e+01 : f32
    %145 = vector.broadcast %cst_51 : f32 to vector<16x1xf32>
    %146 = arith.divf %144, %145 : vector<16x1xf32>
    %147 = vector.broadcast %139 : vector<16x1xf32> to vector<16x32xf32>
    %148 = arith.subf %135, %147 : vector<16x32xf32>
    %cst_52 = arith.constant 9.99999974E-6 : f32
    %149 = vector.broadcast %cst_52 : f32 to vector<16x1xf32>
    %150 = arith.addf %146, %149 : vector<16x1xf32>
    %151 = math.rsqrt %150 : vector<16x1xf32>
    %152 = vector.broadcast %151 : vector<16x1xf32> to vector<16x32xf32>
    %153 = arith.mulf %148, %152 : vector<16x32xf32>
    %154 = vector.broadcast %20 : vector<1x32xf32> to vector<16x32xf32>
    %155 = arith.mulf %153, %154 : vector<16x32xf32>
    %156 = vector.broadcast %21 : vector<1x32xf32> to vector<16x32xf32>
    %157 = arith.addf %155, %156 : vector<16x32xf32>
    %c0_53 = arith.constant 0 : index
    %c0_54 = arith.constant 0 : index
    %158 = vector.load %arg10[%c0_53, %c0_54] : memref<16x32xf32, #tpu.memory_space<vmem>>, vector<16x32xf32>
    tpu.vector_store %arg10[%c0_53, %c0_54], %157 {strides = array<i32>} : memref<16x32xf32, #tpu.memory_space<vmem>>, vector<16x32xf32>,
    return
  }
  func.func @transform_0(%arg0: i32) -> (i32, i32) {
    %c0_i32 = arith.constant 0 : i32
    %c0_i32_0 = arith.constant 0 : i32
    %c0_i32_1 = arith.constant 0 : i32
    return %c0_i32, %c0_i32_0 : i32, i32
  }
  func.func @transform_1(%arg0: i32) -> (i32, i32) {
    %c0_i32 = arith.constant 0 : i32
    %c0_i32_0 = arith.constant 0 : i32
    %c0_i32_1 = arith.constant 0 : i32
    return %c0_i32, %c0_i32_0 : i32, i32
  }
  func.func @transform_2(%arg0: i32) -> (i32, i32) {
    %c0_i32 = arith.constant 0 : i32
    %c0_i32_0 = arith.constant 0 : i32
    %c0_i32_1 = arith.constant 0 : i32
    return %c0_i32, %c0_i32_0 : i32, i32
  }
  func.func @transform_3(%arg0: i32) -> (i32, i32) {
    %c0_i32 = arith.constant 0 : i32
    %c0_i32_0 = arith.constant 0 : i32
    %c0_i32_1 = arith.constant 0 : i32
    return %c0_i32, %c0_i32_0 : i32, i32
  }
  func.func @transform_4(%arg0: i32) -> (i32, i32, i32) {
    %c0_i32 = arith.constant 0 : i32
    %c0_i32_0 = arith.constant 0 : i32
    %c0_i32_1 = arith.constant 0 : i32
    return %arg0, %c0_i32, %c0_i32_0 : i32, i32, i32
  }
  func.func @transform_5(%arg0: i32) -> (i32, i32, i32) {
    %c0_i32 = arith.constant 0 : i32
    %c0_i32_0 = arith.constant 0 : i32
    %c0_i32_1 = arith.constant 0 : i32
    return %arg0, %c0_i32, %c0_i32_0 : i32, i32, i32
  }
  func.func @transform_6(%arg0: i32) -> (i32, i32, i32) {
    %c0_i32 = arith.constant 0 : i32
    %c0_i32_0 = arith.constant 0 : i32
    %c0_i32_1 = arith.constant 0 : i32
    return %arg0, %c0_i32, %c0_i32_0 : i32, i32, i32
  }
  func.func @transform_7(%arg0: i32) -> (i32, i32, i32) {
    %c0_i32 = arith.constant 0 : i32
    %c0_i32_0 = arith.constant 0 : i32
    %c0_i32_1 = arith.constant 0 : i32
    return %arg0, %c0_i32, %c0_i32_0 : i32, i32, i32
  }
  func.func @transform_8(%arg0: i32) -> (i32, i32, i32) {
    %c0_i32 = arith.constant 0 : i32
    %c0_i32_0 = arith.constant 0 : i32
    %c0_i32_1 = arith.constant 0 : i32
    return %arg0, %c0_i32, %c0_i32_0 : i32, i32, i32
  }
  func.func @transform_9(%arg0: i32) -> (i32, i32) {
    %c0_i32 = arith.constant 0 : i32
    %c0_i32_0 = arith.constant 0 : i32
    %c0_i32_1 = arith.constant 0 : i32
    return %c0_i32, %c0_i32_0 : i32, i32
  }
}

</mosaic_0001>

<bundles_post_ra>
// kernel: transformer_encoder_forward.1
= control target key start
LH: loop header
LB: loop body
LE: loop exit
PB: predicated region body
PF: predicated region fallthrough
CT: control target
= control target key end

     0   :  { %14 = vsyncpa [#allocation3], 0  ;;  %s3307_s0 = inlined_call_operand.hbm [shape: f32[16,16], index: 0, kind: input, shape index: {}]   ;;  %s3308_s1 = inlined_call_operand.hbm [shape: f32[16,16], index: 1, kind: input, shape index: {}]   ;;  %s3309_s2 = inlined_call_operand.vmem [shape: f32[16,32], index: 2, kind: input, shape index: {}]   ;;  %s3310_s3 = inlined_call_operand.vmem [shape: f32[1,32], index: 3, kind: input, shape index: {}]   ;;  %s3311_s4 = inlined_call_operand.vmem [shape: f32[6,32,96], index: 4, kind: input, shape index: {}]   ;;  %s3312_s5 = inlined_call_operand.vmem [shape: f32[6,32,32], index: 5, kind: input, shape index: {}]   ;;  %s3313_s6 = inlined_call_operand.vmem [shape: f32[6,32,64], index: 6, kind: input, shape index: {}]   ;;  %s3314_s7 = inlined_call_operand.vmem [shape: f32[6,64,32], index: 7, kind: input, shape index: {}]   ;;  %s3315_s8 = inlined_call_operand.hbm [shape: f32[6,8,96], index: 8, kind: input, shape index: {}]   ;;  %s3316_s9 = inlined_call_operand.hbm [shape: f32[16,32], index: 9, kind: output, shape index: {}]  }
   0x1   :  { %15 = vsyncpa [#allocation6], 0 }
   0x2   :  { %16 = vsyncpa [#allocation4], 0  ;;  %s2908_s30 = smov 0   ;;  %s2910_s10 = smov 0  }
   0x3   :  { %s2912_s11 = smov 0   ;;  %s2914_s12 = smov 0  }
   0x4 LB: > { %s2927_s13 = sadd.s32 4294967295, %s2837_s12   ;;  %p230_p0 = scmp.ne.s32.totalorder %s2829_s10, %s2825_s30  ;;  %s2837_s12 = sphi %s2914_s12, %s3337_s12   ;;  %s2833_s11 = sphi %s2912_s11, %s3336_s11   ;;  %s2829_s10 = sphi %s2910_s10, %s3335_s10   ;;  %s2825_s30 = sphi %s2908_s30, %s3334_s30  }
   0x5   : > { %p3317_p1 = scmp.eq.s32.totalorder %s2927_s13, 0  ;;  %p2173_p2 = scmp.ge.s32.totalorder %s2837_s12, 1 }
   0x6   : > { %p262_p3 = scmp.lt.s32.totalorder %s2837_s12, 7  ;;  %s2839_s16 = smov [#allocation2]  }
   0x7   : > { %p2936_p5 = por %p3317_p1, %p230_p0  ;;  %s274_s17 = sshll.u32 %s2839_s16, 4  ;;  %s275_s17 = int_to_ptr.vmem [resolvable:$true] %s274_s17 }
   0x8   : > { %p2940_p6 = pnand %p2173_p2, %p262_p3  ;;  %s2840_s19 = smov [#allocation5]  }
   0x9   : > { %s3320_s14 = scalar_select %p2936_p5, 1, 0 }
   0xa   : > { %s3321_s15 = scalar_select %p2940_p6, 1, 0 }
   0xb   : > { %p2531_p7 = pneg %p2940_p6  ;;  %s287_s20 = sshll.u32 %s2840_s19, 4  ;;  %s2952_s20 = int_to_ptr.vmem [resolvable:$true] %s287_s20 }
   0xc   : > { %s2679_s23 = scalar_lea.hbm %s3307_s0, 256 }
   0xd   : > { %p2948_p8 = pnand %p2531_p7, %p3317_p1  ;;  %p2680_p9 = scmp.ne.s32.totalorder %s3307_s0, %s2679_s23 }
   0xe   : > { %p2686_p13 = scmp.lt.u32.totalorder %s2679_s23, %s3307_s0 }
   0xf   : > { %p2681_p10 = pneg %p2948_p8 }
  0x11   : > { %p2682_p11 = pnand %p2681_p10, %p2680_p9 }
  0x13   : > { %p2683_p12 = pneg %p2682_p11 }
  0x15   : > { %p2688_p0 = pnand %p2686_p13, %p2683_p12 }
  0x17   : > { %2691 = shalt.err (!%p2688_p0)
}
  0x18   : > { %s2692_s28 = scalar_lea.vmem %s275_s17, 256  ;;  %p2700_p4 = scmp.lt.s32.totalorder %s275_s17, %s275_s17 }
  0x19   : > { %p2693_p2 = scmp.ne.s32.totalorder %s275_s17, %s2692_s28  ;;  %p2701_p1 = scmp.lt.s32.totalorder %s2692_s28, %s2692_s28 }
  0x1b   : > { %p2695_p3 = pnand %p2693_p2, %p2681_p10  ;;  %p2702_p5 = por %p2701_p1, %p2700_p4 }
  0x1d   : > { %p2696_p7 = pneg %p2695_p3 }
  0x1f   : > { %p2703_p6 = pnand %p2702_p5, %p2696_p7 }
  0x21   : > { %2706 = shalt.err (!%p2703_p6)
}
  0x22   : > { %s2841_s29 = smov 128   ;;  %s2842_s30 = smov 8  }
  0x23   : > { %2534 = dma.hbm_to_vmem [thread:$0]  (!%p2948_p8), %s3307_s0, 256, %s275_s17, [#allocation3], %s2841_s29, %s2841_s29, %s2842_s30  }
  0x24   : > { %s2707_s23 = scalar_lea.hbm %s3308_s1, 256 }
  0x25   : > { %p2708_p9 = scmp.ne.s32.totalorder %s3308_s1, %s2707_s23  ;;  %p2714_p5 = scmp.lt.u32.totalorder %s2707_s23, %s3308_s1 }
  0x27   : > { %p2710_p1 = pnand %p2708_p9, %p2681_p10 }
  0x29   : > { %p2711_p4 = pneg %p2710_p1 }
  0x2b   : > { %p2716_p6 = pnand %p2714_p5, %p2711_p4 }
  0x2d   : > { %2719 = shalt.err (!%p2716_p6)
}
  0x2e   : > { %s2720_s17 = scalar_lea.vmem %s2952_s20, 256  ;;  %p2728_p0 = scmp.lt.s32.totalorder %s2952_s20, %s2952_s20 }
  0x2f   : > { %p2721_p11 = scmp.ne.s32.totalorder %s2952_s20, %s2720_s17  ;;  %p2729_p2 = scmp.lt.s32.totalorder %s2720_s17, %s2720_s17 }
  0x31   : > { %p2723_p12 = pnand %p2721_p11, %p2681_p10  ;;  %p2730_p3 = por %p2729_p2, %p2728_p0 }
  0x33   : > { %p2724_p13 = pneg %p2723_p12 }
  0x35   : > { %p2731_p7 = pnand %p2730_p3, %p2724_p13 }
  0x37   : > { %2734 = shalt.err (!%p2731_p7)
}
  0x38   : > { %2537 = dma.hbm_to_vmem [thread:$0]  (!%p2948_p8), %s3308_s1, 256, %s2952_s20, [#allocation6], %s2841_s29, %s2841_s29, %s2842_s30  }
  0x39   : > { %s3002_s19 = sadd.s32 1, %s2837_s12   ;;  %s217_s18 = sadd.s32 1, %s2833_s11 }
  0x3a   : > { %s214_s21 = ssub.s32 %s2837_s12, %s3002_s19  ;;  %p224_p10 = scmp.ne.s32.totalorder %s2833_s11, %s2829_s10 }
  0x3b   : > { %p215_p9 = scmp.eq.s32.totalorder %s214_s21, 0  ;;  %p225_p1 = scmp.eq.s32.totalorder %s2837_s12, 0 }
  0x3c   : > { %p2544_p4 = scmp.lt.s32.totalorder %s2837_s12, 6  ;;  %s339_s22 = sand.u32 1, %s2837_s12  }
  0x3d   : > { %s3013_s23 = scalar_select %p215_p9, %s2833_s11, %s217_s18  }
  0x3e   : > { %p226_p5 = por %p225_p1, %p224_p10  ;;  %s341_s24 = sand.u32 1, %s2833_s11  }
  0x3f   : > { %s2178_s25 = sshll.u32 %s2837_s12, 7  ;;  %s2177_s26 = sshll.u32 %s341_s24, 3 }
  0x40   : > { %s3020_s20 = scalar_lea.hbm %s3315_s8, %s2178_s25  ;;  %p3022_p8 = pnand %p2544_p4, %p226_p5 }
  0x41   : > { %s343_s30 = scalar_lea.vmem [#allocation7], %s2177_s26  ;;  %s340_s12 = scalar_lea.sflag [#allocation3], %s339_s22 }
  0x42   : > { %s350_s28 = sshll.u32 %s343_s30, 4  ;;  %s2735_s16 = scalar_lea.hbm %s3020_s20, 128  ;;  %s3026_s28 = int_to_ptr.vmem [resolvable:$true] %s350_s28 }
  0x43   : > { %p2736_p6 = scmp.ne.s32.totalorder %s3020_s20, %s2735_s16  ;;  %p2737_p11 = pneg %p3022_p8 }
  0x44   : > { %s2740_s24 = scalar_lea.hbm %s3315_s8, 768  ;;  %p2741_p0 = scmp.lt.u32.totalorder %s3020_s20, %s3315_s8 }
  0x45   : > { %p2738_p12 = pnand %p2737_p11, %p2736_p6  ;;  %p2742_p2 = scmp.lt.u32.totalorder %s2740_s24, %s2735_s16 }
  0x46   : > { %p2744_p7 = scmp.lt.u32.totalorder %s2735_s16, %s3020_s20 }
  0x47   : > { %p2739_p13 = pneg %p2738_p12  ;;  %p2743_p3 = por %p2742_p2, %p2741_p0 }
  0x49   : > { %p2745_p10 = por %p2744_p7, %p2743_p3 }
  0x4b   : > { %p2746_p9 = pnand %p2745_p10, %p2739_p13 }
  0x4d   : > { %2749 = shalt.err (!%p2746_p9)
}
  0x4e   : > { %s2750_s22 = scalar_lea.vmem %s3026_s28, 128  ;;  %s2843_s26 = smov [#allocation7]  }
  0x4f   : > { %p2751_p1 = scmp.ne.s32.totalorder %s3026_s28, %s2750_s22  ;;  %s2755_s17 = sshll.u32 %s2843_s26, 4  ;;  %s2756_s17 = int_to_ptr.vmem [resolvable:$false] %s2755_s17 }
  0x50   : > { %s2757_s30 = scalar_lea.vmem %s2756_s17, 256  ;;  %p2758_p6 = scmp.lt.s32.totalorder %s3026_s28, %s2756_s17 }
  0x51   : > { %p2753_p4 = pnand %p2751_p1, %p2737_p11  ;;  %p2759_p12 = scmp.lt.s32.totalorder %s2757_s30, %s2750_s22 }
  0x53   : > { %p2754_p5 = pneg %p2753_p4  ;;  %p2760_p0 = por %p2759_p12, %p2758_p6 }
  0x55   : > { %p2761_p2 = pnand %p2760_p0, %p2754_p5 }
  0x57   : > { %2764 = shalt.err (!%p2761_p2)
}
  0x58   : > { %2541 = dma.hbm_to_vmem [thread:$0]  (!%p3022_p8), %s3020_s20, 128, %s3026_s28, %s340_s12  }
  0x59   : > { %p3324_p13 = scmp.ne.s32.totalorder %s3321_s15, 0 }
  0x5a   : > { %p3325_p11 = scmp.eq.s32.totalorder (!%p3324_p13), %s2927_s13, 0 }
  0x5b   : > { %359 = sbr.rel (%p3324_p13) target bundleno = 3282 (0xcd2), region = 56 }
  0x62   : > { %2808 = dma.done.wait (%p3325_p11), [#allocation3], 256   ;;  %p3326_p3 = pmov %p3325_p11 }
  0x64   : > { %2810 = vsyncadd (%p3326_p3), [#allocation3], 4294967040  ;;  %p3327_p7 = pmov %p3326_p3 }
  0x65   : > { %p3328_p10 = pmov %p3326_p3 }
  0x66   : > { %2812 = dma.done.wait (%p3327_p7), [#allocation6], 256  }
  0x67   : > { %2814 = vsyncadd (%p3328_p10), [#allocation6], 4294967040  ;;  %s369_s29 = sand.u32 1, %s2927_s13   ;;  %s371_s20 = sand.u32 1, %s2829_s10  }
  0x68   : > { %s3065_s28 = sshll.u32 %s371_s20, 3  ;;  %s370_s15 = scalar_lea.sflag [#allocation3], %s369_s29 }
  0x69   : > { %p3329_p8 = scmp.ne.s32.totalorder %s3320_s14, 0 }
  0x6b   : > { %2816 = dma.done.wait (%p3329_p8), %s370_s15, 128  }
  0x6c   : > { %2818 = vsyncadd (%p3329_p8), %s370_s15, 4294967168  ;;  %p423_p9 = scmp.lt.s32.totalorder %s2927_s13, 5  ;;  %p3330_p1 = scmp.ne.s32.totalorder %s2927_s13, 0 }
  0x6d   : > { %v449_v0 = vld [vmem:[%s3309_s2] sm:$0xff] (!%p3330_p1)  ;;  %v450_v1 = vld [vmem:[%s3309_s2 + $0x8] sm:$0xff] (!%p3330_p1)  ;;  %v447_v2 = vld [vmem:[#allocation5] sm:$0xff] (!%p3330_p1)  ;;  %vm458_vm0 = vcmask (!%p3330_p1), 130048   ;;  %vm542_vm1 = vcmask (!%p3330_p1), 261120  }
  0x6e   : > { %s424_s16 = scalar_select %p423_p9, %s2927_s13, 5 }
  0x6f   : > { %446 = sbr.rel (%p3330_p1) target bundleno = 335 (0x14f), region = 72  ;;  %v2435_v3 = vpack.c.bf16 (!%p3330_p1), %v450_v1, %v449_v0  ;;  %2315 = vmatprep.mubr.msk.f32.mxu0 (!%p3330_p1), %vm458_vm0, %v447_v2  ;;  %v448_v4 = vld [vmem:[#allocation5 + $0x8] sm:$0xff] (!%p3330_p1)  ;;  %v2192_v5 = vld [vmem:[%s3310_s3] ss:$0 sm:$0xff] (!%p3330_p1) }
  0x70   : > { %s2237_s18 = sshll.u32 %s424_s16, 5  ;;  %s2240_s21 = sshll.u32 %s424_s16, 6 }
  0x71   : > { %s3077_s27 = scalar_lea.vmem %s3311_s4, %s2237_s18  ;;  %s3082_s17 = scalar_lea.vmem %s3312_s5, %s2237_s18  ;;  %2436 = vmatprep.subr.bf16.mxu0 (!%p3330_p1), %v2435_v3 }
  0x72   : > { %s3087_s14 = scalar_lea.vmem %s3313_s6, %s2237_s18  ;;  %s3092_s12 = scalar_lea.vmem %s3314_s7, %s2240_s21  ;;  %2438 = vmatpush3.bf16.msra.mxu0 (!%p3330_p1), %v2435_v3 }
  0x75   : > { %2316 = vmatmul.mubr.msk.f32.vlgmr.msra.gmra.mrb[0].mxu0 (!%p3330_p1), %vm458_vm0, %v448_v4 }
 0x148   : > { %v2317_v6 = vpop.f32.mrb[0].mxu0 }
 0x149   : > { %v537_v7 = vadd.f32 %v2317_v6, %v2192_v5  ;;  %v531_v8 = vpop.f32.mrb[1].mxu0 }
 0x14a   : > { %v532_v9 = vadd.f32 %v2192_v5, %v531_v8 }
 0x14b   : > { %v541_v10 = vmax.f32 %v537_v7, 0.0 }
 0x14c   : > { %v540_v11 = vmax.f32 %v532_v9, 0.0 }
 0x14d   : > { %544 = vst.msk [vmem:[#allocation8 + $0x8] sm:$0xff] %vm542_vm1, %v541_v10 }
 0x14e   : > { %543 = vst.msk [vmem:[#allocation8] sm:$0xff] %vm542_vm1, %v540_v11 }
 0x14f PF: > { %v547_v12 = vld [vmem:[%s3077_s27] sm:$0xff]  ;;  %v548_v13 = vld [vmem:[%s3077_s27 + $0x8] sm:$0xff]  ;;  %v549_v14 = vld [vmem:[%s3077_s27 + $0x10] sm:$0xff]  ;;  %vm574_vm2 = vcmask 261120   ;;  %v570_v20 = vlaneseq  ;;  %vm662_vm3 = vcmask 64512   ;;  %s2844_s26 = smov 120  }
 0x150   : > { %v2439_v15 = vpack.c.bf16 %v548_v13, %v547_v12  ;;  %v550_v16 = vld [vmem:[%s3077_s27 + $0x18] sm:$0xff]  ;;  %s3331_s27 = scalar_lea.vmem [#allocation7], %s3065_s28  ;;  %s2845_s28 = smov 96   ;;  %vm3144_vm4 = vmpackc.low %vm662_vm3, %vm662_vm3  ;;  %v3166_v47 = vld [vmem:[#allocation2 + $0x8] sm:$0xff]  ;;  %vm746_vm5 = vcmask 130048   ;;  %vm1922_vm6 = vcmask 523264  }
 0x151   : > { %v2443_v18 = vpack.c.bf16 %v550_v16, %v549_v14  ;;  %v3117_v21 = vshrl.u32 %v570_v20, 7  ;;  %v3122_v23 = vld [vmem:[%s3331_s27] sm:$0xff]  ;;  %s2846_s30 = smov 88   ;;  %s2847_s29 = smov 112  }
 0x152   : > { %2440 = vmatprep.subr.bf16.mxu1 %v2439_v15  ;;  %s2848_s20 = smov 80   ;;  %v3168_v48 = vld [vmem:[#allocation2] sm:$0xff]  ;;  %s2849_s15 = smov 56  }
 0x153   : > { %2442 = vmatpush3.bf16.msra.mxu1 %v2439_v15  ;;  %v572_v22 = vsub.s32 0, %v3117_v21  ;;  %s2850_s16 = smov 72   ;;  %s2851_s24 = smov 64  }
 0x154   : > { %2444 = vmatprep.subr.bf16.mxu1 %v2443_v18  ;;  %v3113_v19 = vld [vmem:[#allocation8 + $0x8] sm:$0xff]  ;;  %s2852_s25 = smov 104   ;;  %s2853_s22 = smov 48  }
 0x155   : > { %v3109_v17 = vld [vmem:[#allocation8] sm:$0xff]  ;;  %v573_v24 = vrot.slane %v3122_v23, %v572_v22  ;;  %s2854_s18 = smov 40   ;;  %p2547_p4 = scmp.eq.s32.totalorder %s2927_s13, 5 }
 0x156   : > { %2326 = vmatprep.mubr.msk.f32.mxu1 %vm574_vm2, %v3109_v17 }
 0x157   : > { %2446 = vmatpush3.bf16.msra.mxu1 %v2443_v18 }
 0x15a   : > { %2327 = vmatmul.mubr.msk.f32.vlgmr.msra.gmra.mrb[0].mxu1 %vm574_vm2, %v3113_v19 }
 0x22d   : > { %v2328_v25 = vpop.f32.mrb[0].mxu1 }
 0x22e   : > { %v3125_v26 = vadd.f32 %v2328_v25, %v573_v24  ;;  %v647_v27 = vpop.f32.mrb[1].mxu1 }
 0x22f   : > { %v3127_v28 = vadd.f32 %v647_v27, %v573_v24 }
 0x231   : > { %856 = vrot.lane.b32.xlu1 %v3127_v28, %s2844_s26  ;;  %2333 = vmatprep.mubr.msk.f32.mxu1 %vm662_vm3, %v3127_v28  ;;  %v3134_v29 = vpack.i.bf16 %v3125_v26, %v3127_v28 }
 0x233   : > { %2600 = vrot.lane.b32.xlu0 %v3134_v29, %s2845_s28 }
 0x235   : > { %858 = vrot.lane.b32.xlu1 %v3125_v26, %s2844_s26 }
 0x237   : > { %2605 = vrot.lane.b32.xlu0 %v3134_v29, %s2846_s30 }
 0x239   : > { %1218 = vrot.lane.b32.xlu1 %v3127_v28, %s2847_s29 }
 0x23b   : > { %2610 = vrot.lane.b32.xlu0 %v3134_v29, %s2848_s20 }
 0x23f   : > { %1220 = vrot.lane.b32.xlu0 %v3125_v26, %s2847_s29 }
 0x2a3   : > { %v857_v40 = vpop.permute.xlu1 %856 }
 0x2a5   : > { %v2601_v30 = vpop.permute.xlu0 %2600 }
 0x2a6   : > { %v2603_v31 = vunpack.i.h.bf16 %v2601_v30  ;;  %v2602_v32 = vunpack.i.l.bf16 %v2601_v30 }
 0x2a7   : > { %v859_v44 = vpop.permute.xlu1 %858 }
 0x2a8   : > { %v2447_v34 = vpack.c.bf16 %v2603_v31, %v2602_v32 }
 0x2a9   : > { %v2606_v35 = vpop.permute.xlu0 %2605 }
 0x2aa   : > { %v2608_v36 = vunpack.i.h.bf16 %v2606_v35  ;;  %v2607_v37 = vunpack.i.l.bf16 %v2606_v35  ;;  %2449 = vmatprep.subr.msk.bf16.mxu1 %vm3144_vm4, %v2447_v34 }
 0x2ab   : > { %2452 = vmatpush3.bf16.xpose.msk.msra.mxu1 %vm3144_vm4, %v2447_v34  ;;  %v1219_v45 = vpop.permute.xlu1 %1218 }
 0x2ac   : > { %v2457_v38 = vpack.c.bf16 %v2608_v36, %v2607_v37 }
 0x2ad   : > { %v2611_v39 = vpop.permute.xlu0 %2610 }
 0x2ae   : > { %v2613_v41 = vunpack.i.h.bf16 %v2611_v39  ;;  %v2612_v42 = vunpack.i.l.bf16 %v2611_v39  ;;  %2459 = vmatprep.subr.msk.bf16.mxu1 %vm3144_vm4, %v2457_v38 }
 0x2b0   : > { %v2467_v43 = vpack.c.bf16 %v2613_v41, %v2612_v42 }
 0x2b1   : > { %v1221_v46 = vpop.permute.xlu0 %1220 }
 0x2b2   : > { %2334 = vmatmul.mubr.msk.f32.vlgmr.msra.gmra.mrb[2].mxu1 %vm662_vm3, %v3125_v26 }
 0x2b3   : > { %2462 = vmatpush3.bf16.xpose.msk.msra.mxu1 %vm3144_vm4, %v2457_v38  ;;  %2347 = vmatprep.mubr.msk.f32.mxu1 %vm662_vm3, %v857_v40 }
 0x2b4   : > { %2469 = vmatprep.subr.msk.bf16.mxu1 %vm3144_vm4, %v2467_v43 }
 0x2ba   : > { %2348 = vmatmul.mubr.msk.f32.vlgmr.msra.gmra.mrb[4].mxu1 %vm662_vm3, %v859_v44 }
 0x2bb   : > { %2472 = vmatpush3.bf16.xpose.msk.msra.mxu1 %vm3144_vm4, %v2467_v43  ;;  %2371 = vmatprep.mubr.msk.f32.mxu1 %vm662_vm3, %v1219_v45 }
 0x2c2   : > { %2372 = vmatmul.mubr.msk.f32.vlgmr.msra.gmra.mrb[6].mxu1 %vm662_vm3, %v1221_v46 }
 0x385   : > { %v2335_v49 = vpop.f32.mrb[2].mxu1 }
 0x386   : > { %v743_v50 = vadd.f32 %v2335_v49, %v3166_v47  ;;  %v737_v51 = vpop.f32.mrb[3].mxu1 }
 0x387   : > { %v738_v52 = vadd.f32 %v737_v51, %v3168_v48 }
 0x388   : > { %v750_v53 = vsel %vm746_vm5, %v743_v50, -inf }
 0x389   : > { %751 = vmax.xlane.f32.xlu0 %v750_v53  ;;  %v747_v54 = vsel %vm746_vm5, %v738_v52, -inf }
 0x38a   : > { %748 = vmax.xlane.f32.xlu1 %v747_v54 }
 0x38d   : > { %v2349_v55 = vpop.f32.mrb[4].mxu1 }
 0x38e   : > { %v944_v56 = vadd.f32 %v2349_v55, %v3166_v47  ;;  %v938_v57 = vpop.f32.mrb[5].mxu1 }
 0x38f   : > { %v939_v58 = vadd.f32 %v938_v57, %v3168_v48 }
 0x390   : > { %v950_v59 = vsel %vm746_vm5, %v944_v56, -inf }
 0x391   : > { %951 = vmax.xlane.f32.xlu1 %v950_v59  ;;  %v947_v60 = vsel %vm746_vm5, %v939_v58, -inf }
 0x392   : > { %948 = vmax.xlane.f32.xlu0 %v947_v60 }
 0x395   : > { %v2373_v61 = vpop.f32.mrb[6].mxu1 }
 0x396   : > { %v1300_v62 = vpop.f32.mrb[7].mxu1  ;;  %v1306_v24 = vadd.f32 %v2373_v61, %v3166_v47 }
 0x397   : > { %v1301_v22 = vadd.f32 %v1300_v62, %v3168_v48 }
 0x398   : > { %v1312_v27 = vsel %vm746_vm5, %v1306_v24, -inf }
 0x399   : > { %v1309_v25 = vsel %vm746_vm5, %v1301_v22, -inf }
 0x416   : > { %v752_v63 = vpop.xlane.xlu0 %751 }
 0x417   : > { %v754_v0 = vsub.f32 %v743_v50, %v752_v63  ;;  %v749_v1 = vpop.xlane.xlu1 %748 }
 0x418   : > { %v753_v2 = vsub.f32 %v738_v52, %v749_v1  ;;  %v552_v1 = vld [vmem:[%s3082_s17 + $0x8] sm:$0xff] }
 0x419   : > { %v757_v3 = vmul.f32 1.442695, %v754_v0 }
 0x41a   : > { %v755_v4 = vmul.f32 1.442695, %v753_v2  ;;  %v551_v2 = vld [vmem:[%s3082_s17] sm:$0xff] }
 0x41b   : > { %2639 = vpow2.f32 %v757_v3 }
 0x41c   : > { %2641 = vpow2.f32 %v755_v4 }
 0x41e   : > { %v952_v5 = vpop.xlane.xlu1 %951 }
 0x41f   : > { %v954_v6 = vsub.f32 %v944_v56, %v952_v5  ;;  %v949_v7 = vpop.xlane.xlu0 %948 }
 0x420   : > { %v953_v8 = vsub.f32 %v939_v58, %v949_v7 }
 0x421   : > { %v957_v9 = vmul.f32 1.442695, %v954_v6 }
 0x422   : > { %v955_v10 = vmul.f32 1.442695, %v953_v8 }
 0x423   : > { %2643 = vpow2.f32 %v957_v9 }
 0x424   : > { %2645 = vpow2.f32 %v955_v10 }
 0x425   : > { %v2640_v11 = vpop.eup %2639 }
 0x426   : > { %v2642_v12 = vpop.eup %2641  ;;  %v762_v13 = vsel %vm746_vm5, %v2640_v11, 0.0 }
 0x427   : > { %763 = vadd.xlane.f32.xlu1 %v762_v13  ;;  %v759_v14 = vsel %vm746_vm5, %v2642_v12, 0.0 }
 0x428   : > { %760 = vadd.xlane.f32.xlu0 %v759_v14 }
 0x42d   : > { %v3180_v15 = vpop.eup %2643 }
 0x42e   : > { %v2646_v16 = vpop.eup %2645  ;;  %v962_v18 = vsel %vm746_vm5, %v3180_v15, 0.0 }
 0x42f   : > { %963 = vadd.xlane.f32.xlu1 %v962_v18  ;;  %v959_v20 = vsel %vm746_vm5, %v2646_v16, 0.0 }
 0x430   : > { %960 = vadd.xlane.f32.xlu0 %v959_v20 }
 0x440   : > { %2620 = vrot.lane.b32.xlu1 %v3134_v29, %s2849_s15 }
 0x444   : > { %2625 = vrot.lane.b32.xlu1 %v3134_v29, %s2850_s16 }
 0x446   : > { %2615 = vrot.lane.b32.xlu0 %v3134_v29, %s2851_s24 }
 0x448   : > { %1503 = vrot.lane.b32.xlu1 %v3125_v26, %s2852_s25 }
 0x44a   : > { %1501 = vrot.lane.b32.xlu0 %v3127_v28, %s2852_s25 }
 0x469   : > { %1310 = vmax.xlane.f32.xlu0 %v1309_v25  ;;  %v553_v25 = vld [vmem:[%s3082_s17 + $0x10] sm:$0xff] }
 0x46c   : > { %1313 = vmax.xlane.f32.xlu1 %v1312_v27 }
 0x47d   : > { %2630 = vrot.lane.b32.xlu1 %v3134_v29, %s2853_s22 }
 0x481   : > { %2635 = vrot.lane.b32.xlu1 %v3134_v29, %s2854_s18 }
 0x4b4   : > { %v764_v26 = vpop.xlane.xlu1 %763 }
 0x4b5   : > { %v761_v30 = vpop.xlane.xlu0 %760 }
 0x4b6   : > { %2647 = vrcp.f32 %v761_v30 }
 0x4b7   : > { %2649 = vrcp.f32 %v764_v26 }
 0x4bc   : > { %v964_v28 = vpop.xlane.xlu1 %963 }
 0x4bd   : > { %v961_v31 = vpop.xlane.xlu0 %960 }
 0x4be   : > { %2651 = vrcp.f32 %v961_v31 }
 0x4bf   : > { %2653 = vrcp.f32 %v964_v28 }
 0x4c0   : > { %v2648_v32 = vpop.eup %2647  ;;  %v2621_v34 = vpop.permute.xlu1 %2620 }
 0x4c1   : > { %v2616_v35 = vpop.permute.xlu0 %2615  ;;  %v766_v36 = vmul.f32 %v2648_v32, %v2642_v12  ;;  %v2623_v37 = vunpack.i.h.bf16 %v2621_v34  ;;  %v2622_v38 = vunpack.i.l.bf16 %v2621_v34  ;;  %v2650_v42 = vpop.eup %2649 }
 0x4c2   : > { %v2618_v39 = vunpack.i.h.bf16 %v2616_v35  ;;  %v2617_v40 = vunpack.i.l.bf16 %v2616_v35  ;;  %v768_v51 = vmul.f32 %v2650_v42, %v2640_v11 }
 0x4c3   : > { %2340 = vmatprep.mubr.msk.f32.mxu0 %vm746_vm5, %v766_v36  ;;  %v2463_v46 = vpack.c.bf16 %v2623_v37, %v2622_v38 }
 0x4c4   : > { %v2626_v41 = vpop.permute.xlu1 %2625  ;;  %v2453_v29 = vpack.c.bf16 %v2618_v39, %v2617_v40 }
 0x4c5   : > { %v2628_v43 = vunpack.i.h.bf16 %v2626_v41  ;;  %v2627_v44 = vunpack.i.l.bf16 %v2626_v41  ;;  %v1502_v45 = vpop.permute.xlu0 %1501 }
 0x4c6   : > { %2454 = vmatprep.subr.bf16.mxu0 %v2453_v29  ;;  %2390 = vmatprep.mubr.msk.f32.mxu1 %vm662_vm3, %v1502_v45 }
 0x4c7   : > { %v2477_v49 = vpack.c.bf16 %v2628_v43, %v2627_v44  ;;  %2456 = vmatpush3.bf16.msra.mxu0 %v2453_v29  ;;  %v554_v43 = vld [vmem:[%s3082_s17 + $0x18] sm:$0xff] }
 0x4c8   : > { %v2652_v50 = vpop.eup %2651  ;;  %2464 = vmatprep.subr.bf16.mxu0 %v2463_v46  ;;  %v1504_v55 = vpop.permute.xlu1 %1503 }
 0x4c9   : > { %v2654_v52 = vpop.eup %2653  ;;  %2479 = vmatprep.subr.msk.bf16.mxu1 %vm3144_vm4, %v2477_v49  ;;  %v966_v53 = vmul.f32 %v2652_v50, %v2646_v16 }
 0x4ca   : > { %2341 = vmatmul.mubr.msk.f32.vlgmr.msra.gmra.mrb[0].mxu0 %vm746_vm5, %v768_v51  ;;  %2482 = vmatpush3.bf16.xpose.msk.msra.mxu1 %vm3144_vm4, %v2477_v49  ;;  %v968_v54 = vmul.f32 %v2654_v52, %v3180_v15 }
 0x4cb   : > { %2466 = vmatpush3.bf16.msra.mxu0 %v2463_v46  ;;  %2354 = vmatprep.mubr.msk.f32.mxu0 %vm746_vm5, %v966_v53 }
 0x4cc   : > { %2357 = vmatprep.subr.mxu0 %v552_v1 }
 0x4ce   : > { %2355 = vmatmul.mubr.msk.f32.vlgmr.msra.gmra.mrb[2].mxu0 %vm746_vm5, %v968_v54  ;;  %v1786_v54 = vsub.s32 1, %v3117_v21 }
 0x4cf   : > { %2358 = vmatpush3.msra.mxu0 %v552_v1 }
 0x4d0   : > { %2362 = vmatprep.subr.mxu0 %v551_v2 }
 0x4d1   : > { %2391 = vmatmul.mubr.msk.f32.vlgmr.msra.gmra.mrb[8].mxu1 %vm662_vm3, %v1504_v55  ;;  %v1787_v55 = vrot.slane %v3122_v23, %v1786_v54 }
 0x4f6   : > { %v1311_v56 = vpop.xlane.xlu0 %1310 }
 0x4f7   : > { %v1315_v57 = vsub.f32 %v1301_v22, %v1311_v56 }
 0x4f9   : > { %v1317_v58 = vmul.f32 1.442695, %v1315_v57  ;;  %v1314_v59 = vpop.xlane.xlu1 %1313 }
 0x4fa   : > { %v1316_v60 = vsub.f32 %v1306_v24, %v1314_v59 }
 0x4fb   : > { %2655 = vpow2.f32 %v1317_v58 }
 0x4fc   : > { %v1319_v33 = vmul.f32 1.442695, %v1316_v60 }
 0x4fd   : > { %v2631_v4 = vpop.permute.xlu1 %2630 }
 0x4fe   : > { %2657 = vpow2.f32 %v1319_v33  ;;  %v2633_v8 = vunpack.i.h.bf16 %v2631_v4  ;;  %v2632_v9 = vunpack.i.l.bf16 %v2631_v4 }
 0x500   : > { %v2473_v12 = vpack.c.bf16 %v2633_v8, %v2632_v9  ;;  %v556_v8 = vld [vmem:[%s3087_s14 + $0x8] sm:$0xff] }
 0x501   : > { %v2636_v22 = vpop.permute.xlu1 %2635 }
 0x502   : > { %v2638_v27 = vunpack.i.h.bf16 %v2636_v22  ;;  %v2637_v30 = vunpack.i.l.bf16 %v2636_v22  ;;  %v563_v22 = vld [vmem:[%s3092_s12 + $0x20] sm:$0xff] }
 0x505   : > { %v2656_v61 = vpop.eup %2655 }
 0x506   : > { %v1321_v62 = vsel %vm746_vm5, %v2656_v61, 0.0 }
 0x507   : > { %1322 = vadd.xlane.f32.xlu0 %v1321_v62 }
 0x508   : > { %v2658_v63 = vpop.eup %2657 }
 0x509   : > { %v1324_v0 = vsel %vm746_vm5, %v2658_v63, 0.0 }
 0x50b   : > { %1325 = vadd.xlane.f32.xlu0 %v1324_v0 }
 0x594   : > { %v1323_v3 = vpop.xlane.xlu0 %1322 }
 0x595   : > { %2659 = vrcp.f32 %v1323_v3 }
 0x598   : > { %v1326_v6 = vpop.xlane.xlu0 %1325 }
 0x599   : > { %2661 = vrcp.f32 %v1326_v6 }
 0x59d   : > { %v2342_v5 = vpop.f32.mrb[0].mxu0 }
 0x59e   : > { %v847_v7 = vpop.f32.mrb[1].mxu0 }
 0x59f   : > { %v2660_v20 = vpop.eup %2659 }
 0x5a0   : > { %v1328_v28 = vmul.f32 %v2660_v20, %v2656_v61 }
 0x5a1   : > { %v2356_v10 = vpop.f32.mrb[2].mxu0 }
 0x5a2   : > { %v1047_v11 = vpop.f32.mrb[3].mxu0 }
 0x5a3   : > { %2359 = vmatprep.mubr.msk.f32.mxu0 %vm662_vm3, %v1047_v11  ;;  %v2662_v24 = vpop.eup %2661  ;;  %v558_v11 = vld [vmem:[%s3087_s14 + $0x18] sm:$0xff] }
 0x5a4   : > { %2360 = vmatmul.mubr.msk.f32.vlgmr.msra.gmra.mrb[4].mxu0 %vm662_vm3, %v2356_v10  ;;  %v2392_v13 = vpop.f32.mrb[8].mxu1  ;;  %v1330_v31 = vmul.f32 %v2662_v24, %v2658_v63  ;;  %v557_v10 = vld [vmem:[%s3087_s14 + $0x10] sm:$0xff]  ;;  %v564_v24 = vld [vmem:[%s3092_s12 + $0x28] sm:$0xff] }
 0x5a5   : > { %2363 = vmatpush3.msra.mxu0 %v551_v2  ;;  %2364 = vmatprep.mubr.msk.f32.mxu0 %vm662_vm3, %v847_v7  ;;  %v1583_v14 = vpop.f32.mrb[9].mxu1  ;;  %v1589_v16 = vadd.f32 %v2392_v13, %v3166_v47  ;;  %v2483_v47 = vpack.c.bf16 %v2638_v27, %v2637_v30  ;;  %v555_v7 = vld [vmem:[%s3087_s14] sm:$0xff] }
 0x5a6   : > { %2474 = vmatprep.subr.bf16.mxu0 %v2473_v12  ;;  %v1584_v15 = vadd.f32 %v1583_v14, %v3168_v48  ;;  %v2487_v9 = vpack.c.bf16 %v556_v8, %v555_v7  ;;  %v559_v13 = vld [vmem:[%s3092_s12] sm:$0xff]  ;;  %v560_v14 = vld [vmem:[%s3092_s12 + $0x8] sm:$0xff] }
 0x5a7   : > { %v1595_v26 = vsel %vm746_vm5, %v1589_v16, -inf }
 0x5a8   : > { %v1592_v18 = vsel %vm746_vm5, %v1584_v15, -inf  ;;  %2488 = vmatprep.subr.bf16.mxu1 %v2487_v9 }
 0x5a9   : > { %1593 = vmax.xlane.f32.xlu0 %v1592_v18  ;;  %2490 = vmatpush3.bf16.msra.mxu1 %v2487_v9  ;;  %v562_v18 = vld [vmem:[%s3092_s12 + $0x18] sm:$0xff] }
 0x5ac   : > { %2365 = vmatmul.mubr.msk.f32.vlgmr.msra.gmra.mrb[4].mxu0 %vm662_vm3, %v2342_v5 }
 0x5ad   : > { %2476 = vmatpush3.bf16.msra.mxu0 %v2473_v12  ;;  %1596 = vmax.xlane.f32.xlu0 %v1595_v26  ;;  %v2491_v12 = vpack.c.bf16 %v558_v11, %v557_v10 }
 0x5ae   : > { %2378 = vmatprep.mubr.msk.f32.mxu0 %vm746_vm5, %v1328_v28  ;;  %2381 = vmatprep.subr.mxu0 %v553_v25 }
 0x5af   : > { %2492 = vmatprep.subr.bf16.mxu1 %v2491_v12 }
 0x5b0   : > { %2379 = vmatmul.mubr.msk.f32.vlgmr.msra.gmra.mrb[6].mxu0 %vm746_vm5, %v1330_v31  ;;  %2494 = vmatpush3.bf16.msra.mxu1 %v2491_v12 }
 0x5b1   : > { %2382 = vmatpush3.msra.mxu0 %v553_v25  ;;  %v2503_v25 = vpack.c.bf16 %v564_v24, %v563_v22 }
 0x5b2   : > { %2484 = vmatprep.subr.bf16.mxu0 %v2483_v47 }
 0x636   : > { %v1594_v48 = vpop.xlane.xlu0 %1593 }
 0x637   : > { %v1598_v32 = vsub.f32 %v1584_v15, %v1594_v48  ;;  %v561_v15 = vld [vmem:[%s3092_s12 + $0x10] sm:$0xff]  ;;  %v1821_v48 = vsub.s32 4, %v3117_v21 }
 0x638   : > { %v2499_v20 = vpack.c.bf16 %v562_v18, %v561_v15  ;;  %v2034_v15 = vsub.s32 6, %v3117_v21 }
 0x639   : > { %v1600_v34 = vmul.f32 1.442695, %v1598_v32  ;;  %v1827_v32 = vsub.s32 5, %v3117_v21 }
 0x63a   : > { %v1597_v35 = vpop.xlane.xlu0 %1596  ;;  %v2035_v18 = vrot.slane %v3122_v23, %v2034_v15 }
 0x63b   : > { %2663 = vpow2.f32 %v1600_v34  ;;  %v1599_v36 = vsub.f32 %v1589_v16, %v1597_v35  ;;  %v2495_v16 = vpack.c.bf16 %v560_v14, %v559_v13  ;;  %v1822_v34 = vrot.slane %v3122_v23, %v1821_v48 }
 0x63d   : > { %v1602_v37 = vmul.f32 1.442695, %v1599_v36 }
 0x63f   : > { %2665 = vpow2.f32 %v1602_v37  ;;  %v1828_v37 = vrot.slane %v3122_v23, %v1827_v32 }
 0x645   : > { %v2664_v38 = vpop.eup %2663 }
 0x646   : > { %v1604_v39 = vsel %vm746_vm5, %v2664_v38, 0.0 }
 0x647   : > { %1605 = vadd.xlane.f32.xlu0 %v1604_v39 }
 0x649   : > { %v2666_v40 = vpop.eup %2665 }
 0x64a   : > { %v1607_v41 = vsel %vm746_vm5, %v2666_v40, 0.0 }
 0x64b   : > { %1608 = vadd.xlane.f32.xlu0 %v1607_v41 }
 0x683   : > { %v2380_v29 = vpop.f32.mrb[6].mxu0 }
 0x684   : > { %v1409_v42 = vpop.f32.mrb[7].mxu0 }
 0x685   : > { %2383 = vmatprep.mubr.msk.f32.mxu0 %vm662_vm3, %v1409_v42 }
 0x686   : > { %2384 = vmatmul.mubr.msk.f32.vlgmr.msra.gmra.mrb[4].mxu0 %vm662_vm3, %v2380_v29 }
 0x687   : > { %2486 = vmatpush3.bf16.msra.mxu0 %v2483_v47 }
 0x688   : > { %2400 = vmatprep.subr.mxu0 %v554_v43 }
 0x6d4   : > { %v1606_v44 = vpop.xlane.xlu0 %1605 }
 0x6d5   : > { %2667 = vrcp.f32 %v1606_v44  ;;  %v566_v44 = vld [vmem:[%s3092_s12 + $0x38] sm:$0xff] }
 0x6d8   : > { %v1609_v45 = vpop.xlane.xlu0 %1608 }
 0x6d9   : > { %2669 = vrcp.f32 %v1609_v45 }
 0x6df   : > { %v2668_v46 = vpop.eup %2667 }
 0x6e0   : > { %v1611_v49 = vmul.f32 %v2668_v46, %v2664_v38  ;;  %v1833_v46 = vsub.s32 2, %v3117_v21 }
 0x6e2   : > { %2397 = vmatprep.mubr.msk.f32.mxu0 %vm746_vm5, %v1611_v49  ;;  %v1834_v49 = vrot.slane %v3122_v23, %v1833_v46 }
 0x6e3   : > { %v2670_v50 = vpop.eup %2669 }
 0x6e4   : > { %v1613_v51 = vmul.f32 %v2670_v50, %v2666_v40 }
 0x6e6   : > { %2398 = vmatmul.mubr.msk.f32.vlgmr.msra.gmra.mrb[8].mxu0 %vm746_vm5, %v1613_v51 }
 0x6e7   : > { %2401 = vmatpush3.msra.mxu0 %v554_v43  ;;  %v565_v43 = vld [vmem:[%s3092_s12 + $0x30] sm:$0xff]  ;;  %s2855_s12 = smov [#allocation8]  }
 0x6e8   : > { %2496 = vmatprep.subr.bf16.mxu0 %v2495_v16  ;;  %v2507_v45 = vpack.c.bf16 %v566_v44, %v565_v43  ;;  %s2052_s17 = sshll.u32 %s2855_s12, 4  ;;  %s2053_s17 = int_to_ptr.vmem [resolvable:$true] %s2052_s17 }
 0x6e9   : > { %s2765_s14 = scalar_lea.vmem %s2053_s17, 256  ;;  %p2772_p0 = scmp.lt.s32.totalorder %s2053_s17, %s2053_s17 }
 0x6ea   : > { %p2766_p5 = scmp.ne.s32.totalorder %s2053_s17, %s2765_s14  ;;  %p2773_p2 = scmp.lt.s32.totalorder %s2765_s14, %s2765_s14 }
 0x6ec   : > { %p2767_p6 = pnand %p2766_p5, %p2547_p4  ;;  %p2774_p13 = por %p2773_p2, %p2772_p0 }
 0x6ee   : > { %p2768_p12 = pneg %p2767_p6 }
 0x6f0   : > { %p2775_p11 = pnand %p2774_p13, %p2768_p12 }
 0x7b9   : > { %v2399_v52 = vpop.f32.mrb[8].mxu0 }
 0x7ba   : > { %v1692_v53 = vpop.f32.mrb[9].mxu0 }
 0x7bb   : > { %2402 = vmatprep.mubr.msk.f32.mxu0 %vm662_vm3, %v1692_v53 }
 0x7bc   : > { %2403 = vmatmul.mubr.msk.f32.vlgmr.msra.gmra.mrb[4].mxu0 %vm662_vm3, %v2399_v52 }
 0x7bd   : > { %2498 = vmatpush3.bf16.msra.mxu0 %v2495_v16  ;;  %v2040_v16 = vsub.s32 7, %v3117_v21 }
 0x7be   : > { %2500 = vmatprep.subr.bf16.mxu0 %v2499_v20 }
 0x7bf   : > { %v2041_v24 = vrot.slane %v3122_v23, %v2040_v16 }
 0x7c1   : > { %2502 = vmatpush3.bf16.msra.mxu0 %v2499_v20 }
 0x7c2   : > { %2504 = vmatprep.subr.bf16.mxu0 %v2503_v25 }
 0x7c5   : > { %2506 = vmatpush3.bf16.msra.mxu0 %v2503_v25 }
 0x7c6   : > { %2508 = vmatprep.subr.bf16.mxu0 %v2507_v45 }
 0x7c9   : > { %2510 = vmatpush3.bf16.msra.mxu0 %v2507_v45 }
 0x88f   : > { %v2404_v56 = vpop.f32.mrb[4].mxu0 }
 0x890   : > { %v1789_v57 = vadd.f32 %v2404_v56, %v1787_v55  ;;  %v1773_v58 = vpop.f32.mrb[5].mxu0  ;;  %v1920_v56 = vsub.s32 3, %v3117_v21 }
 0x891   : > { %v1788_v59 = vadd.f32 %v1787_v55, %v1773_v58 }
 0x892   : > { %v1791_v60 = vadd.f32 %v1789_v57, %v3113_v19  ;;  %v1921_v57 = vrot.slane %v3122_v23, %v1920_v56 }
 0x893   : > { %v1790_v33 = vadd.f32 %v1788_v59, %v3109_v17 }
 0x894   : > { %v1795_v61 = vsel %vm574_vm2, %v1791_v60, 0.0 }
 0x895   : > { %1796 = vadd.xlane.f32.xlu1 %v1795_v61  ;;  %v1792_v62 = vsel %vm574_vm2, %v1790_v33, 0.0 }
 0x896   : > { %1793 = vadd.xlane.f32.xlu0 %v1792_v62 }
 0x922   : > { %v1797_v63 = vpop.xlane.xlu1 %1796 }
 0x923   : > { %v1800_v0 = vmul.f32 0.03125, %v1797_v63  ;;  %v1794_v1 = vpop.xlane.xlu0 %1793 }
 0x924   : > { %v1799_v2 = vmul.f32 0.03125, %v1794_v1 }
 0x925   : > { %v1802_v3 = vsub.f32 %v1791_v60, %v1800_v0 }
 0x926   : > { %v1801_v4 = vsub.f32 %v1790_v33, %v1799_v2 }
 0x927   : > { %v1804_v19 = vmul.f32 %v1802_v3, %v1802_v3 }
 0x928   : > { %v1803_v5 = vmul.f32 %v1801_v4, %v1801_v4 }
 0x929   : > { %v1808_v6 = vsel %vm574_vm2, %v1804_v19, 0.0 }
 0x92a   : > { %v1805_v17 = vsel %vm574_vm2, %v1803_v5, 0.0 }
 0x92b   : > { %1806 = vadd.xlane.f32.xlu0 %v1805_v17 }
 0x92f   : > { %1809 = vadd.xlane.f32.xlu0 %v1808_v6 }
 0x9b8   : > { %v1807_v27 = vpop.xlane.xlu0 %1806 }
 0x9b9   : > { %v1811_v30 = vmul.f32 0.03125, %v1807_v27 }
 0x9bb   : > { %v1813_v26 = vadd.f32 1e-05, %v1811_v30 }
 0x9bc   : > { %v1810_v28 = vpop.xlane.xlu0 %1809 }
 0x9bd   : > { %2671 = vrsqrt.f32 %v1813_v26  ;;  %v1812_v31 = vmul.f32 0.03125, %v1810_v28 }
 0x9bf   : > { %v1814_v47 = vadd.f32 1e-05, %v1812_v31 }
 0x9c1   : > { %2673 = vrsqrt.f32 %v1814_v47 }
 0x9c7   : > { %v2672_v35 = vpop.eup %2671 }
 0x9c8   : > { %v1817_v36 = vmul.f32 %v2672_v35, %v1801_v4 }
 0x9ca   : > { %v1823_v38 = vmul.f32 %v1822_v34, %v1817_v36 }
 0x9cb   : > { %v2674_v39 = vpop.eup %2673 }
 0x9cc   : > { %v1818_v40 = vmul.f32 %v2674_v39, %v1802_v3  ;;  %v1829_v41 = vadd.f32 %v1828_v37, %v1823_v38 }
 0x9ce   : > { %v1824_v29 = vmul.f32 %v1822_v34, %v1818_v40  ;;  %2413 = vmatprep.mubr.msk.f32.mxu1 %vm574_vm2, %v1829_v41 }
 0x9d0   : > { %v1830_v42 = vadd.f32 %v1828_v37, %v1824_v29 }
 0x9d2   : > { %2414 = vmatmul.mubr.msk.f32.vlgmr.msra.gmra.mrb[10].mxu1 %vm574_vm2, %v1830_v42 }
 0xaa5   : > { %v2415_v50 = vpop.f32.mrb[10].mxu1 }
 0xaa6   : > { %v1913_v51 = vadd.f32 %v2415_v50, %v1834_v49  ;;  %v1907_v52 = vpop.f32.mrb[11].mxu1 }
 0xaa7   : > { %v1908_v53 = vadd.f32 %v1907_v52, %v1834_v49 }
 0xaa8   : > { %v1917_v55 = vmax.f32 %v1913_v51, 0.0 }
 0xaa9   : > { %v1916_v54 = vmax.f32 %v1908_v53, 0.0 }
 0xaab   : > { %2432 = vmatprep.mubr.msk.f32.mxu0 %vm1922_vm6, %v1916_v54 }
 0xaac   : > { %2433 = vmatmul.mubr.msk.f32.vlgmr.msra.gmra.mrb[10].mxu0 %vm1922_vm6, %v1917_v55 }
 0xb7f   : > { %v2434_v58 = vpop.f32.mrb[10].mxu0 }
 0xb80   : > { %v1995_v59 = vpop.f32.mrb[11].mxu0  ;;  %v2001_v60 = vadd.f32 %v2434_v58, %v1921_v57 }
 0xb81   : > { %v1996_v33 = vadd.f32 %v1995_v59, %v1921_v57 }
 0xb82   : > { %v2005_v63 = vadd.f32 %v2001_v60, %v1830_v42 }
 0xb83   : > { %v2004_v61 = vadd.f32 %v1996_v33, %v1829_v41 }
 0xb84   : > { %v2009_v0 = vsel %vm574_vm2, %v2005_v63, 0.0 }
 0xb85   : > { %v2006_v62 = vsel %vm574_vm2, %v2004_v61, 0.0 }
 0xb86   : > { %2007 = vadd.xlane.f32.xlu0 %v2006_v62 }
 0xb8a   : > { %2010 = vadd.xlane.f32.xlu0 %v2009_v0 }
 0xc13   : > { %v2008_v1 = vpop.xlane.xlu0 %2007 }
 0xc14   : > { %v2012_v2 = vmul.f32 0.03125, %v2008_v1 }
 0xc16   : > { %v2014_v3 = vsub.f32 %v2004_v61, %v2012_v2 }
 0xc17   : > { %v2011_v4 = vpop.xlane.xlu0 %2010 }
 0xc18   : > { %v2013_v5 = vmul.f32 0.03125, %v2011_v4  ;;  %v2016_v17 = vmul.f32 %v2014_v3, %v2014_v3 }
 0xc1a   : > { %v2015_v19 = vsub.f32 %v2005_v63, %v2013_v5  ;;  %v2018_v6 = vsel %vm574_vm2, %v2016_v17, 0.0 }
 0xc1b   : > { %2019 = vadd.xlane.f32.xlu0 %v2018_v6 }
 0xc1c   : > { %v2017_v7 = vmul.f32 %v2015_v19, %v2015_v19 }
 0xc1e   : > { %v2021_v8 = vsel %vm574_vm2, %v2017_v7, 0.0 }
 0xc1f   : > { %2022 = vadd.xlane.f32.xlu0 %v2021_v8 }
 0xca8   : > { %v2020_v9 = vpop.xlane.xlu0 %2019 }
 0xca9   : > { %v2024_v10 = vmul.f32 0.03125, %v2020_v9 }
 0xcab   : > { %v2026_v11 = vadd.f32 1e-05, %v2024_v10 }
 0xcac   : > { %v2023_v12 = vpop.xlane.xlu0 %2022 }
 0xcad   : > { %2675 = vrsqrt.f32 %v2026_v11  ;;  %v2025_v13 = vmul.f32 0.03125, %v2023_v12 }
 0xcaf   : > { %v2027_v14 = vadd.f32 1e-05, %v2025_v13 }
 0xcb1   : > { %2677 = vrsqrt.f32 %v2027_v14 }
 0xcb7   : > { %v2676_v20 = vpop.eup %2675 }
 0xcb8   : > { %v2030_v22 = vmul.f32 %v2676_v20, %v2014_v3 }
 0xcba   : > { %v2036_v25 = vmul.f32 %v2035_v18, %v2030_v22 }
 0xcbb   : > { %v2678_v27 = vpop.eup %2677 }
 0xcbc   : > { %v2031_v30 = vmul.f32 %v2678_v27, %v2015_v19  ;;  %v2042_v26 = vadd.f32 %v2041_v24, %v2036_v25 }
 0xcbe   : > { %v2037_v28 = vmul.f32 %v2035_v18, %v2031_v30  ;;  %2044 = vst.msk [vmem:[#allocation8] sm:$0xff] %vm574_vm2, %v2042_v26 }
 0xcc0   : > { %v2043_v31 = vadd.f32 %v2041_v24, %v2037_v28 }
 0xcc2   : > { %2045 = vst.msk [vmem:[#allocation8 + $0x8] sm:$0xff] %vm574_vm2, %v2043_v31 }
 0xcc3   : > { %2778 = shalt.err (!%p2775_p11)
}
 0xcc4   : > { %s2779_s26 = scalar_lea.hbm %s3316_s9, 256 }
 0xcc5   : > { %p2780_p3 = scmp.ne.s32.totalorder %s3316_s9, %s2779_s26  ;;  %p2785_p8 = scmp.lt.u32.totalorder %s2779_s26, %s3316_s9 }
 0xcc7   : > { %p2781_p7 = pnand %p2780_p3, %p2547_p4 }
 0xcc9   : > { %p2782_p10 = pneg %p2781_p7 }
 0xccb   : > { %p2787_p9 = pnand %p2785_p8, %p2782_p10 }
 0xccd   : > { %2790 = shalt.err (!%p2787_p9)
}
 0xcce   : > { %s2856_s15 = smov 128   ;;  %s2857_s16 = smov 8  }
 0xccf   : > { %2528 = dma.vmem_to_hbm [thread:$0]  (%p2547_p4), %s2053_s17, 256, %s3316_s9, [#allocation4], %s2856_s15, %s2856_s15, %s2857_s16  }
 0xcd0   : > { %2820 = dma.done.wait (%p2547_p4), [#allocation4], 256  }
 0xcd1   : > { %2822 = vsyncadd (%p2547_p4), [#allocation4], 4294967040 }
 0xcd2 PF: > { %p19_p1 = scmp.ge.s32.totalorder %s3002_s19, 8   ;;  %s3334_s30 = smov %s2829_s10 }
 0xcd3   : > { %s3335_s10 = smov %s2833_s11  ;;  %s3336_s11 = smov %s3013_s23 }
 0xcd4   : > { %s3337_s12 = smov %s3002_s19  ;;  %21 = sbr.rel (!%p19_p1) target bundleno = 4 (0x4), region = 116 }
 0xcdb   :  { %2068 = vsyncpa [#allocation3], 1 }
 0xcdc   :  { %2070 = vsyncpa [#allocation3 + $0x1], 1 }
 0xcdd   :  { %2071 = vsyncpa [#allocation6], 1 }
 0xcde   :  { %2072 = vsyncpa [#allocation4], 1 }
 0xcdf   :  { %2074 = vsyncpa [#allocation4 + $0x1], 1 }

</bundles_post_ra>
